<compile_context>
chip_gen: v5e
topology: v5e:2x2
jax: 0.10.0
libtpu: 0.0.40
codegen_flags: <defaults>
</compile_context>

<pallas_src>
import jax
import jax.numpy as jnp
from jax.experimental import pallas as pl
from jax.experimental.pallas import tpu as pltpu

HIDDEN = 512
OUT_FEATURES = 2
OUT_PAD = 128          # lane-pad the 2-wide output so the epilogue store is unmasked
MAX_TILE = 2048        # batch-tile cap (VMEM-safe on v7x's 64 MiB per-TC VMEM)
MEGACORE_MIN_B = 512   # force >=2 grid steps (megacore sharding) once B is this large


def _round_up(n, m):
    return ((n + m - 1) // m) * m


def mlp_kernel(x_ref, w1_ref, b1_ref, w2_ref, b2_ref, w3_ref, b3_ref,
               w4_ref, b4_ref, o_ref):
    # ---- Layer 1 (K=2): pure-VPU broadcast FMA in bf16, keeps the MXU free.
    x = x_ref[...].astype(jnp.bfloat16)                   # (TB, 2) bf16
    w1 = w1_ref[...]                                      # (2, 512) bf16
    h = x[:, 0:1] * w1[0:1, :] + x[:, 1:2] * w1[1:2, :] + b1_ref[...]
    h = jnp.maximum(h, 0.0)                               # bf16 ReLU

    # ---- Layer 2: bf16 x bf16 -> f32 accumulate on the MXU; bf16 epilogue.
    h = jnp.dot(h, w2_ref[...], preferred_element_type=jnp.float32)
    h = jnp.maximum(h.astype(jnp.bfloat16) + b2_ref[...], 0.0)

    # ---- Layer 3
    h = jnp.dot(h, w3_ref[...], preferred_element_type=jnp.float32)
    h = jnp.maximum(h.astype(jnp.bfloat16) + b3_ref[...], 0.0)

    # ---- Layer 4: N lane-padded 2 -> 128 (zero-padded weight columns); f32 bias add
    #      (only 128 lanes wide, negligible VALU cost, keeps the f32 output contract).
    y = jnp.dot(h, w4_ref[...], preferred_element_type=jnp.float32)
    o_ref[...] = (y + b4_ref[...]).astype(o_ref.dtype)


def neural_network_forward(x, params, *, max_tile=MAX_TILE):
    """x: (B, 2) float32. Returns (B, 2) float32."""
    B = x.shape[0]

    # Padding-bounded tile selection: split B into num_steps near-equal tiles of
    # rows (multiple of 8), instead of rounding B up to a full max_tile multiple.
    num_steps = pl.cdiv(B, max_tile)
    if B >= MEGACORE_MIN_B:
        num_steps = max(num_steps, 2)     # let ("parallel",) shard across 2 TCs (v7x)
    TB = _round_up(pl.cdiv(B, num_steps), 8)
    Bp = num_steps * TB
    if Bp != B:
        x = jnp.pad(x, ((0, Bp - B), (0, 0)))
    grid = (num_steps,)

    resident = pl.BlockSpec(memory_space=pltpu.MemorySpace.VMEM)  # whole array, DMA'd once

    cost = pl.CostEstimate(
        flops=2 * Bp * HIDDEN * (2 + HIDDEN + HIDDEN + OUT_PAD),
        transcendentals=0,
        bytes_accessed=(x.size * 4
                        + sum(int(params[k].size) * params[k].dtype.itemsize
                              for k in params)
                        + Bp * OUT_PAD * 4),
    )

    out_padded = pl.pallas_call(
        mlp_kernel,
        out_shape=jax.ShapeDtypeStruct((Bp, OUT_PAD), jnp.float32),
        grid=grid,
        in_specs=[
            pl.BlockSpec((TB, 2), lambda i: (i, 0)),   # x: batch-tiled, pipelined
            resident,  # w1 (2, 512)   bf16
            resident,  # b1 (1, 512)   bf16
            resident,  # w2 (512, 512) bf16
            resident,  # b2 (1, 512)   bf16
            resident,  # w3 (512, 512) bf16
            resident,  # b3 (1, 512)   bf16
            resident,  # w4 (512, 128) bf16 (zero-padded beyond col 2)
            resident,  # b4 (1, 128)   f32  (zero-padded beyond col 2)
        ],
        out_specs=pl.BlockSpec((TB, OUT_PAD), lambda i: (i, 0)),
        compiler_params=pltpu.CompilerParams(
            dimension_semantics=("parallel",),          # megacore sharding on v7x
            vmem_limit_bytes=48 * 1024 * 1024,
        ),
        cost_estimate=cost,
    )(x,
      params["w1"], params["b1"],
      params["w2"], params["b2"],
      params["w3"], params["b3"],
      params["w4"], params["b4"])

    return out_padded[:B, :OUT_FEATURES]


def init_params(key):
    """PyTorch nn.Linear-style init (uniform(+-1/sqrt(fan_in))).

    Weights stored as (in, out) bf16; hidden-layer biases bf16 (bf16 epilogue),
    final bias f32.  The last layer's weight/bias are lane-padded 2 -> 128 columns.
    """
    dims = [(2, HIDDEN), (HIDDEN, HIDDEN), (HIDDEN, HIDDEN), (HIDDEN, OUT_FEATURES)]
    params = {}
    keys = jax.random.split(key, 2 * len(dims))
    for i, (fan_in, fan_out) in enumerate(dims):
        bound = 1.0 / (fan_in ** 0.5)
        w = jax.random.uniform(keys[2 * i], (fan_in, fan_out),
                               minval=-bound, maxval=bound, dtype=jnp.float32)
        b = jax.random.uniform(keys[2 * i + 1], (1, fan_out),
                               minval=-bound, maxval=bound, dtype=jnp.float32)
        if fan_out == OUT_FEATURES:  # final layer: lane-pad to 128 columns, bias stays f32
            w = jnp.pad(w, ((0, 0), (0, OUT_PAD - OUT_FEATURES)))
            b = jnp.pad(b, ((0, 0), (0, OUT_PAD - OUT_FEATURES)))
            params[f"w{i + 1}"] = w.astype(jnp.bfloat16)
            params[f"b{i + 1}"] = b
        else:
            params[f"w{i + 1}"] = w.astype(jnp.bfloat16)
            params[f"b{i + 1}"] = b.astype(jnp.bfloat16)
    return params


def reference_forward(x, params):
    """Pure-JAX reference mirroring the kernel's bf16-operand / f32-accumulate math."""
    xb = x.astype(jnp.bfloat16)
    w1 = params["w1"]
    h = xb[:, 0:1] * w1[0:1, :] + xb[:, 1:2] * w1[1:2, :] + params["b1"]
    h = jnp.maximum(h, 0.0)
    h = jnp.dot(h, params["w2"], preferred_element_type=jnp.float32)
    h = jnp.maximum(h.astype(jnp.bfloat16) + params["b2"], 0.0)
    h = jnp.dot(h, params["w3"], preferred_element_type=jnp.float32)
    h = jnp.maximum(h.astype(jnp.bfloat16) + params["b3"], 0.0)
    y = jnp.dot(h, params["w4"], preferred_element_type=jnp.float32)
    return (y + params["b4"])[:, :OUT_FEATURES]


if __name__ == "__main__":
    key = jax.random.PRNGKey(0)
    pkey, xkey = jax.random.split(key)
    params = init_params(pkey)

    batch = 8
    x = jax.random.normal(xkey, (batch, 2), dtype=jnp.float32)

    y = neural_network_forward(x, params)
    y = jax.block_until_ready(y)

    y_ref = reference_forward(x, params)
    assert y.shape == (batch, OUT_FEATURES)
    assert jnp.allclose(y, y_ref, atol=2e-2, rtol=2e-2), "mismatch vs reference"

    print("KERNEL_OK")
</pallas_src>

<mosaic_0001>
module attributes {stable_mosaic.version = 11 : i64} {
  func.func @mlp_kernel(%arg0: i32, %arg1: memref<8x2xf32, #tpu.memory_space<vmem>>, %arg2: memref<2x512xbf16, #tpu.memory_space<vmem>>, %arg3: memref<1x512xbf16, #tpu.memory_space<vmem>>, %arg4: memref<512x512xbf16, #tpu.memory_space<vmem>>, %arg5: memref<1x512xbf16, #tpu.memory_space<vmem>>, %arg6: memref<512x512xbf16, #tpu.memory_space<vmem>>, %arg7: memref<1x512xbf16, #tpu.memory_space<vmem>>, %arg8: memref<512x128xbf16, #tpu.memory_space<vmem>>, %arg9: memref<1x128xf32, #tpu.memory_space<vmem>>, %arg10: memref<8x128xf32, #tpu.memory_space<vmem>>) attributes {dimension_semantics = [#tpu.dimension_semantics<parallel>], iteration_bounds = array<i64: 1>, scalar_prefetch = 0 : i64, scratch_operands = 0 : i64, tpu.core_type = #tpu.core_type<tc>, window_params = [{transform_indices = @transform_0, window_bounds = array<i64: 8, 2>}, {pipeline_mode = #tpu.pipeline_mode<synchronous>, transform_indices = @transform_1, window_bounds = array<i64: 2, 512>}, {pipeline_mode = #tpu.pipeline_mode<synchronous>, transform_indices = @transform_2, window_bounds = array<i64: 1, 512>}, {pipeline_mode = #tpu.pipeline_mode<synchronous>, transform_indices = @transform_3, window_bounds = array<i64: 512, 512>}, {pipeline_mode = #tpu.pipeline_mode<synchronous>, transform_indices = @transform_4, window_bounds = array<i64: 1, 512>}, {pipeline_mode = #tpu.pipeline_mode<synchronous>, transform_indices = @transform_5, window_bounds = array<i64: 512, 512>}, {pipeline_mode = #tpu.pipeline_mode<synchronous>, transform_indices = @transform_6, window_bounds = array<i64: 1, 512>}, {pipeline_mode = #tpu.pipeline_mode<synchronous>, transform_indices = @transform_7, window_bounds = array<i64: 512, 128>}, {pipeline_mode = #tpu.pipeline_mode<synchronous>, transform_indices = @transform_8, window_bounds = array<i64: 1, 128>}, {transform_indices = @transform_9, window_bounds = array<i64: 8, 128>}]} {
    %c0 = arith.constant 0 : index
    %c0_0 = arith.constant 0 : index
    %0 = vector.load %arg1[%c0, %c0_0] : memref<8x2xf32, #tpu.memory_space<vmem>>, vector<8x2xf32>
    %1 = arith.truncf %0 : vector<8x2xf32> to vector<8x2xbf16>
    %c0_1 = arith.constant 0 : index
    %c0_2 = arith.constant 0 : index
    %2 = vector.load %arg2[%c0_1, %c0_2] : memref<2x512xbf16, #tpu.memory_space<vmem>>, vector<2x512xbf16>
    %3 = vector.extract_strided_slice %1 {offsets = [0, 0], sizes = [8, 1], strides = [1, 1]} : vector<8x2xbf16> to vector<8x1xbf16>
    %4 = vector.extract_strided_slice %2 {offsets = [0, 0], sizes = [1, 512], strides = [1, 1]} : vector<2x512xbf16> to vector<1x512xbf16>
    %5 = vector.broadcast %3 : vector<8x1xbf16> to vector<8x512xbf16>
    %6 = vector.broadcast %4 : vector<1x512xbf16> to vector<8x512xbf16>
    %7 = arith.mulf %5, %6 : vector<8x512xbf16>
    %8 = vector.extract_strided_slice %1 {offsets = [0, 1], sizes = [8, 1], strides = [1, 1]} : vector<8x2xbf16> to vector<8x1xbf16>
    %9 = vector.extract_strided_slice %2 {offsets = [1, 0], sizes = [1, 512], strides = [1, 1]} : vector<2x512xbf16> to vector<1x512xbf16>
    %10 = vector.broadcast %8 : vector<8x1xbf16> to vector<8x512xbf16>
    %11 = vector.broadcast %9 : vector<1x512xbf16> to vector<8x512xbf16>
    %12 = arith.mulf %10, %11 : vector<8x512xbf16>
    %13 = arith.addf %7, %12 : vector<8x512xbf16>
    %c0_3 = arith.constant 0 : index
    %c0_4 = arith.constant 0 : index
    %14 = vector.load %arg3[%c0_3, %c0_4] : memref<1x512xbf16, #tpu.memory_space<vmem>>, vector<1x512xbf16>
    %15 = vector.broadcast %14 : vector<1x512xbf16> to vector<8x512xbf16>
    %16 = arith.addf %13, %15 : vector<8x512xbf16>
    %cst = arith.constant 0.000000e+00 : bf16
    %17 = vector.broadcast %cst : bf16 to vector<8x512xbf16>
    %18 = arith.maximumf %16, %17 : vector<8x512xbf16>
    %c0_5 = arith.constant 0 : index
    %c0_6 = arith.constant 0 : index
    %19 = vector.load %arg4[%c0_5, %c0_6] : memref<512x512xbf16, #tpu.memory_space<vmem>>, vector<512x512xbf16>
    %cst_7 = arith.constant dense<0.000000e+00> : vector<8x512xf32>
    %20 = tpu.matmul %18, %19, %cst_7 {dimension_numbers = #tpu.dot_dimension_numbers<[1], [0], [0], [1], [0, 0, 1, 1], [], []>} : vector<8x512xbf16>, vector<512x512xbf16>, vector<8x512xf32> -> vector<8x512xf32>
    %21 = arith.truncf %20 : vector<8x512xf32> to vector<8x512xbf16>
    %c0_8 = arith.constant 0 : index
    %c0_9 = arith.constant 0 : index
    %22 = vector.load %arg5[%c0_8, %c0_9] : memref<1x512xbf16, #tpu.memory_space<vmem>>, vector<1x512xbf16>
    %23 = vector.broadcast %22 : vector<1x512xbf16> to vector<8x512xbf16>
    %24 = arith.addf %21, %23 : vector<8x512xbf16>
    %cst_10 = arith.constant 0.000000e+00 : bf16
    %25 = vector.broadcast %cst_10 : bf16 to vector<8x512xbf16>
    %26 = arith.maximumf %24, %25 : vector<8x512xbf16>
    %c0_11 = arith.constant 0 : index
    %c0_12 = arith.constant 0 : index
    %27 = vector.load %arg6[%c0_11, %c0_12] : memref<512x512xbf16, #tpu.memory_space<vmem>>, vector<512x512xbf16>
    %cst_13 = arith.constant dense<0.000000e+00> : vector<8x512xf32>
    %28 = tpu.matmul %26, %27, %cst_13 {dimension_numbers = #tpu.dot_dimension_numbers<[1], [0], [0], [1], [0, 0, 1, 1], [], []>} : vector<8x512xbf16>, vector<512x512xbf16>, vector<8x512xf32> -> vector<8x512xf32>
    %29 = arith.truncf %28 : vector<8x512xf32> to vector<8x512xbf16>
    %c0_14 = arith.constant 0 : index
    %c0_15 = arith.constant 0 : index
    %30 = vector.load %arg7[%c0_14, %c0_15] : memref<1x512xbf16, #tpu.memory_space<vmem>>, vector<1x512xbf16>
    %31 = vector.broadcast %30 : vector<1x512xbf16> to vector<8x512xbf16>
    %32 = arith.addf %29, %31 : vector<8x512xbf16>
    %cst_16 = arith.constant 0.000000e+00 : bf16
    %33 = vector.broadcast %cst_16 : bf16 to vector<8x512xbf16>
    %34 = arith.maximumf %32, %33 : vector<8x512xbf16>
    %c0_17 = arith.constant 0 : index
    %c0_18 = arith.constant 0 : index
    %35 = vector.load %arg8[%c0_17, %c0_18] : memref<512x128xbf16, #tpu.memory_space<vmem>>, vector<512x128xbf16>
    %cst_19 = arith.constant dense<0.000000e+00> : vector<8x128xf32>
    %36 = tpu.matmul %34, %35, %cst_19 {dimension_numbers = #tpu.dot_dimension_numbers<[1], [0], [0], [1], [0, 0, 1, 1], [], []>} : vector<8x512xbf16>, vector<512x128xbf16>, vector<8x128xf32> -> vector<8x128xf32>
    %c0_20 = arith.constant 0 : index
    %c0_21 = arith.constant 0 : index
    %37 = vector.load %arg9[%c0_20, %c0_21] : memref<1x128xf32, #tpu.memory_space<vmem>>, vector<1x128xf32>
    %38 = vector.broadcast %37 : vector<1x128xf32> to vector<8x128xf32>
    %39 = arith.addf %36, %38 : vector<8x128xf32>
    %c0_22 = arith.constant 0 : index
    %c0_23 = arith.constant 0 : index
    %40 = vector.load %arg10[%c0_22, %c0_23] : memref<8x128xf32, #tpu.memory_space<vmem>>, vector<8x128xf32>
    tpu.vector_store %arg10[%c0_22, %c0_23], %39 {strides = array<i32>} : memref<8x128xf32, #tpu.memory_space<vmem>>, vector<8x128xf32>,
    return
  }
  func.func @transform_0(%arg0: i32) -> (i32, i32) {
    %c0_i32 = arith.constant 0 : i32
    %c0_i32_0 = arith.constant 0 : i32
    return %arg0, %c0_i32 : i32, i32
  }
  func.func @transform_1(%arg0: i32) -> (i32, i32) {
    %c0_i32 = arith.constant 0 : i32
    %c0_i32_0 = arith.constant 0 : i32
    %c0_i32_1 = arith.constant 0 : i32
    return %c0_i32, %c0_i32_0 : i32, i32
  }
  func.func @transform_2(%arg0: i32) -> (i32, i32) {
    %c0_i32 = arith.constant 0 : i32
    %c0_i32_0 = arith.constant 0 : i32
    %c0_i32_1 = arith.constant 0 : i32
    return %c0_i32, %c0_i32_0 : i32, i32
  }
  func.func @transform_3(%arg0: i32) -> (i32, i32) {
    %c0_i32 = arith.constant 0 : i32
    %c0_i32_0 = arith.constant 0 : i32
    %c0_i32_1 = arith.constant 0 : i32
    return %c0_i32, %c0_i32_0 : i32, i32
  }
  func.func @transform_4(%arg0: i32) -> (i32, i32) {
    %c0_i32 = arith.constant 0 : i32
    %c0_i32_0 = arith.constant 0 : i32
    %c0_i32_1 = arith.constant 0 : i32
    return %c0_i32, %c0_i32_0 : i32, i32
  }
  func.func @transform_5(%arg0: i32) -> (i32, i32) {
    %c0_i32 = arith.constant 0 : i32
    %c0_i32_0 = arith.constant 0 : i32
    %c0_i32_1 = arith.constant 0 : i32
    return %c0_i32, %c0_i32_0 : i32, i32
  }
  func.func @transform_6(%arg0: i32) -> (i32, i32) {
    %c0_i32 = arith.constant 0 : i32
    %c0_i32_0 = arith.constant 0 : i32
    %c0_i32_1 = arith.constant 0 : i32
    return %c0_i32, %c0_i32_0 : i32, i32
  }
  func.func @transform_7(%arg0: i32) -> (i32, i32) {
    %c0_i32 = arith.constant 0 : i32
    %c0_i32_0 = arith.constant 0 : i32
    %c0_i32_1 = arith.constant 0 : i32
    return %c0_i32, %c0_i32_0 : i32, i32
  }
  func.func @transform_8(%arg0: i32) -> (i32, i32) {
    %c0_i32 = arith.constant 0 : i32
    %c0_i32_0 = arith.constant 0 : i32
    %c0_i32_1 = arith.constant 0 : i32
    return %c0_i32, %c0_i32_0 : i32, i32
  }
  func.func @transform_9(%arg0: i32) -> (i32, i32) {
    %c0_i32 = arith.constant 0 : i32
    %c0_i32_0 = arith.constant 0 : i32
    return %arg0, %c0_i32 : i32, i32
  }
}

</mosaic_0001>

<bundles_post_ra>
// kernel: tpu_custom_call.1
= control target key start
LH: loop header
LB: loop body
LE: loop exit
PB: predicated region body
PF: predicated region fallthrough
CT: control target
= control target key end

     0   :  { %14 = vsyncpa [#allocation3], 0  ;;  %s4402_s0 = inlined_call_operand.vmem [shape: f32[8,2], index: 0, kind: input, shape index: {}]   ;;  %s4403_s1 = inlined_call_operand.vmem [shape: bf16[2,512], index: 1, kind: input, shape index: {}]   ;;  %s4404_s2 = inlined_call_operand.vmem [shape: bf16[1,512], index: 2, kind: input, shape index: {}]   ;;  %s4405_s3 = inlined_call_operand.hbm [shape: bf16[512,512], index: 3, kind: input, shape index: {}]   ;;  %s4406_s4 = inlined_call_operand.vmem [shape: bf16[1,512], index: 4, kind: input, shape index: {}]   ;;  %s4407_s5 = inlined_call_operand.hbm [shape: bf16[512,512], index: 5, kind: input, shape index: {}]   ;;  %s4408_s6 = inlined_call_operand.hbm [shape: bf16[1,512], index: 6, kind: input, shape index: {}]   ;;  %s4409_s7 = inlined_call_operand.hbm [shape: bf16[512,128], index: 7, kind: input, shape index: {}]   ;;  %s4410_s8 = inlined_call_operand.vmem [shape: f32[1,128], index: 8, kind: input, shape index: {}]   ;;  %s4411_s9 = inlined_call_operand.hbm [shape: f32[8,128], index: 9, kind: output, shape index: {}]  }
   0x1   :  { %15 = vsyncpa [#allocation6], 0 }
   0x2   :  { %16 = vsyncpa [#allocation9], 0 }
   0x3   :  { %17 = vsyncpa [#allocation4], 0  ;;  %s43_s11 = sshll.u32 %s4407_s5, 4  ;;  %s4195_s12 = smov [#allocation5]   ;;  %s44_s11 = int_to_ptr.hbm [resolvable:$true] %s43_s11 }
   0x4   :  { %s45_s13 = sshll.u32 %s4195_s12, 4  ;;  %s28_s16 = sshll.u32 %s4405_s3, 4  ;;  %s46_s13 = int_to_ptr.vmem [resolvable:$true] %s45_s13  ;;  %s29_s16 = int_to_ptr.hbm [resolvable:$true] %s28_s16 }
   0x5   :  { %s4196_s17 = smov 256   ;;  %s4197_s18 = smov 16  }
   0x6   :  { %51 = dma.hbm_to_vmem [thread:$0]  %s44_s11, 16384, %s46_s13, [#allocation6], %s4196_s17, %s4196_s17, %s4197_s18  }
   0x7   :  { %s4198_s19 = smov [#allocation2]   ;;  %s57_s23 = sshll.u32 %s4408_s6, 4  ;;  %s58_s23 = int_to_ptr.hbm [resolvable:$true] %s57_s23 }
   0x8   :  { %s30_s20 = sshll.u32 %s4198_s19, 4  ;;  %s67_s25 = sshll.u32 %s4409_s7, 4  ;;  %s31_s20 = int_to_ptr.vmem [resolvable:$true] %s30_s20  ;;  %s68_s25 = int_to_ptr.hbm [resolvable:$true] %s67_s25 }
   0x9   :  { %36 = dma.hbm_to_vmem [thread:$0]  %s29_s16, 16384, %s31_s20, [#allocation3], %s4196_s17, %s4196_s17, %s4197_s18  }
   0xa   :  { %s4199_s26 = smov [#allocation7]   ;;  %s4200_s3 = smov [#allocation8]  }
   0xb   :  { %s59_s27 = sshll.u32 %s4199_s26, 4  ;;  %s69_s28 = sshll.u32 %s4200_s3, 4  ;;  %s60_s27 = int_to_ptr.vmem [resolvable:$true] %s59_s27  ;;  %s70_s28 = int_to_ptr.vmem [resolvable:$true] %s69_s28 }
   0xc   :  { %62 = dma.hbm_to_vmem [thread:$0]  %s58_s23, 64, %s60_s27, [#allocation6]  }
   0xd   :  { %s4201_s29 = smov 64   ;;  %s4202_s30 = smov 4  }
   0xe   :  { %75 = dma.hbm_to_vmem [thread:$0]  %s68_s25, 4096, %s70_s28, [#allocation9], %s4201_s29, %s4201_s29, %s4202_s30  }
   0xf   :  { %4187 = dma.done.wait [#allocation3], 16384  }
  0x10   :  { %4188 = vsyncadd [#allocation3], 4294950912 }
  0x11   :  { %4189 = dma.done.wait [#allocation6], 16448  }
  0x12   :  { %4190 = vsyncadd [#allocation6], 4294950848 }
  0x13   :  { %4191 = dma.done.wait [#allocation9], 4096  }
  0x14   :  { %4192 = vsyncadd [#allocation9], 4294963200  ;;  %v4203_v0 = vmov 0   ;;  %v94_v1 = vld [vmem:[%s4402_s0] sm:$0xff]  ;;  %v2726_v2 = vld [vmem:[#allocation2 + $0xe0] sm:$0xf] }
  0x15   :  { %4064 = vset.pattern.permute.xlu0 %v4203_v0  ;;  %v3794_v3 = vld [vmem:[#allocation2 + $0xec] sm:$0xf0]  ;;  %v95_v4 = vpack.c.bf16 %v94_v1, %v94_v1  ;;  %v2854_v6 = vld [vmem:[#allocation2 + $0x1e0] sm:$0xf]  ;;  %v4204_v47 = vmov 1   ;;  %s4206_s14 = smov [#allocation10]  }
  0x16   :  { %v2727_v5 = vor.u32 %v3794_v3, %v2726_v2  ;;  %v3826_v7 = vld [vmem:[#allocation2 + $0x1ec] sm:$0xf0]  ;;  %v2982_v8 = vld [vmem:[#allocation2 + $0x2e0] sm:$0xf]  ;;  %s2598_s15 = sshll.u32 %s4206_s14, 4  ;;  %s2600_s18 = sshll.u32 %s4411_s9, 4  ;;  %s2599_s15 = int_to_ptr.vmem [resolvable:$true] %s2598_s15  ;;  %s2601_s18 = int_to_ptr.hbm [resolvable:$true] %s2600_s18 }
  0x17   :  { %v2855_v9 = vor.u32 %v3826_v7, %v2854_v6  ;;  %v3858_v10 = vld [vmem:[#allocation2 + $0x2ec] sm:$0xf0]  ;;  %v3110_v11 = vld [vmem:[#allocation2 + $0x3e0] sm:$0xf]  ;;  %99 = vperm.xlu0 %4064, %v95_v4  }
  0x18   :  { %v3890_v12 = vld [vmem:[#allocation2 + $0x3ec] sm:$0xf0]  ;;  %1002 = vmatpush.bf16.msra.mxu0 %v2727_v5  ;;  %v2983_v13 = vor.u32 %v3858_v10, %v2982_v8  ;;  %v2710_v15 = vld [vmem:[#allocation2 + $0xc0] sm:$0xf] }
  0x19   :  { %v3111_v14 = vor.u32 %v3890_v12, %v3110_v11  ;;  %v3790_v16 = vld [vmem:[#allocation2 + $0xcc] sm:$0xf0]  ;;  %v2838_v17 = vld [vmem:[#allocation2 + $0x1c0] sm:$0xf]  ;;  %1015 = vmatpush.bf16.msra.mxu1 %v2855_v9  ;;  %v96_v9 = vld [vmem:[%s4403_s1] sm:$0xf] }
  0x1a   :  { %v2711_v18 = vor.u32 %v3790_v16, %v2710_v15  ;;  %v3822_v19 = vld [vmem:[#allocation2 + $0x1cc] sm:$0xf0]  ;;  %v2966_v20 = vld [vmem:[#allocation2 + $0x2c0] sm:$0xf]  ;;  %1028 = vmatpush.bf16.msra.mxu2 %v2983_v13  ;;  %107 = vst [vmem:[#allocation1] ss:$9 sm:$0xff] %v96_v9 }
  0x1b   :  { %v3854_v21 = vld [vmem:[#allocation2 + $0x2cc] sm:$0xf0]  ;;  %1041 = vmatpush.bf16.msra.mxu3 %v3111_v14  ;;  %v2839_v22 = vor.u32 %v3822_v19, %v2838_v17  ;;  %v3094_v24 = vld [vmem:[#allocation2 + $0x3c0] sm:$0xf] }
  0x1c   :  { %v2967_v23 = vor.u32 %v3854_v21, %v2966_v20  ;;  %v3886_v25 = vld [vmem:[#allocation2 + $0x3cc] sm:$0xf0]  ;;  %v2694_v26 = vld [vmem:[#allocation2 + $0xa0] sm:$0xf]  ;;  %1003 = vmatpush.bf16.msra.mxu0 %v2711_v18 }
  0x1d   :  { %v3095_v27 = vor.u32 %v3886_v25, %v3094_v24  ;;  %v3786_v28 = vld [vmem:[#allocation2 + $0xac] sm:$0xf0]  ;;  %v2822_v29 = vld [vmem:[#allocation2 + $0x1a0] sm:$0xf]  ;;  %1016 = vmatpush.bf16.msra.mxu1 %v2839_v22 }
  0x1e   :  { %v3818_v30 = vld [vmem:[#allocation2 + $0x1ac] sm:$0xf0]  ;;  %v2695_v31 = vor.u32 %v3786_v28, %v2694_v26  ;;  %v2950_v32 = vld [vmem:[#allocation2 + $0x2a0] sm:$0xf]  ;;  %1029 = vmatpush.bf16.msra.mxu2 %v2967_v23 }
  0x1f   :  { %v3850_v33 = vld [vmem:[#allocation2 + $0x2ac] sm:$0xf0]  ;;  %v3078_v34 = vld [vmem:[#allocation2 + $0x3a0] sm:$0xf]  ;;  %v2823_v35 = vor.u32 %v3818_v30, %v2822_v29  ;;  %1042 = vmatpush.bf16.msra.mxu3 %v3095_v27  ;;  %4065 = vset.pattern.permute.xlu0 %v4204_v47  ;;  %v3856_v47 = vld [vmem:[#allocation2 + $0x2e4] sm:$0xf] }
  0x20   :  { %v3882_v36 = vld [vmem:[#allocation2 + $0x3ac] sm:$0xf0]  ;;  %v2678_v37 = vld [vmem:[#allocation2 + $0x80] sm:$0xf]  ;;  %v2951_v39 = vor.u32 %v3850_v33, %v2950_v32  ;;  %1004 = vmatpush.bf16.msra.mxu0 %v2695_v31  ;;  %136 = vperm.xlu0 %4065, %v95_v4  }
  0x21   :  { %v3782_v38 = vld [vmem:[#allocation2 + $0x8c] sm:$0xf0]  ;;  %v3079_v40 = vor.u32 %v3882_v36, %v3078_v34  ;;  %v2806_v41 = vld [vmem:[#allocation2 + $0x180] sm:$0xf]  ;;  %1017 = vmatpush.bf16.msra.mxu1 %v2823_v35  ;;  %v4275_v25 = vld [vmem:[#allocation1] sm:$0xff] }
  0x22   :  { %v3814_v42 = vld [vmem:[#allocation2 + $0x18c] sm:$0xf0]  ;;  %v2934_v43 = vld [vmem:[#allocation2 + $0x280] sm:$0xf]  ;;  %v2679_v48 = vor.u32 %v3782_v38, %v2678_v37  ;;  %1030 = vmatpush.bf16.msra.mxu2 %v2951_v39 }
  0x23   :  { %v3846_v44 = vld [vmem:[#allocation2 + $0x28c] sm:$0xf0]  ;;  %v3062_v45 = vld [vmem:[#allocation2 + $0x380] sm:$0xf]  ;;  %v2807_v49 = vor.u32 %v3814_v42, %v2806_v41  ;;  %1043 = vmatpush.bf16.msra.mxu3 %v3079_v40  ;;  %v3792_v40 = vld [vmem:[#allocation2 + $0xe4] sm:$0xf] }
  0x24   :  { %v3878_v46 = vld [vmem:[#allocation2 + $0x38c] sm:$0xf0]  ;;  %v2662_v50 = vld [vmem:[#allocation2 + $0x60] sm:$0xf]  ;;  %v2935_v52 = vor.u32 %v3846_v44, %v2934_v43  ;;  %1005 = vmatpush.bf16.msra.mxu0 %v2679_v48  ;;  %v2728_v42 = vld [vmem:[#allocation2 + $0xf0] sm:$0xf0] }
  0x25   :  { %v3778_v51 = vld [vmem:[#allocation2 + $0x6c] sm:$0xf0]  ;;  %v3063_v53 = vor.u32 %v3878_v46, %v3062_v45  ;;  %v2790_v54 = vld [vmem:[#allocation2 + $0x160] sm:$0xf]  ;;  %1018 = vmatpush.bf16.msra.mxu1 %v2807_v49  ;;  %v3824_v43 = vld [vmem:[#allocation2 + $0x1e4] sm:$0xf]  ;;  %v2731_v45 = vor.u32 %v3792_v40, %v2728_v42 }
  0x26   :  { %v3810_v55 = vld [vmem:[#allocation2 + $0x16c] sm:$0xf0]  ;;  %v2918_v56 = vld [vmem:[#allocation2 + $0x260] sm:$0xf]  ;;  %v2663_v60 = vor.u32 %v3778_v51, %v2662_v50  ;;  %1031 = vmatpush.bf16.msra.mxu2 %v2935_v52  ;;  %v2856_v44 = vld [vmem:[#allocation2 + $0x1f0] sm:$0xf0] }
  0x27   :  { %v3842_v57 = vld [vmem:[#allocation2 + $0x26c] sm:$0xf0]  ;;  %v3046_v58 = vld [vmem:[#allocation2 + $0x360] sm:$0xf]  ;;  %v2791_v61 = vor.u32 %v3810_v55, %v2790_v54  ;;  %1044 = vmatpush.bf16.msra.mxu3 %v3063_v53  ;;  %v2859_v46 = vor.u32 %v3824_v43, %v2856_v44  ;;  %v2984_v48 = vld [vmem:[#allocation2 + $0x2f0] sm:$0xf0] }
  0x28   :  { %v3874_v59 = vld [vmem:[#allocation2 + $0x36c] sm:$0xf0]  ;;  %v2646_v62 = vld [vmem:[#allocation2 + $0x40] sm:$0xf]  ;;  %v2919_v0 = vor.u32 %v3842_v57, %v2918_v56  ;;  %1006 = vmatpush.bf16.msra.mxu0 %v2663_v60  ;;  %v3888_v49 = vld [vmem:[#allocation2 + $0x3e4] sm:$0xf]  ;;  %v2987_v50 = vor.u32 %v3856_v47, %v2984_v48 }
  0x29   :  { %v3774_v63 = vld [vmem:[#allocation2 + $0x4c] sm:$0xf0]  ;;  %v3047_v1 = vor.u32 %v3874_v59, %v3046_v58  ;;  %v2774_v2 = vld [vmem:[#allocation2 + $0x140] sm:$0xf]  ;;  %1019 = vmatpush.bf16.msra.mxu1 %v2791_v61  ;;  %v3112_v51 = vld [vmem:[#allocation2 + $0x3f0] sm:$0xf0] }
  0x2a   :  { %v3806_v3 = vld [vmem:[#allocation2 + $0x14c] sm:$0xf0]  ;;  %v2902_v4 = vld [vmem:[#allocation2 + $0x240] sm:$0xf]  ;;  %v2647_v8 = vor.u32 %v3774_v63, %v2646_v62  ;;  %1032 = vmatpush.bf16.msra.mxu2 %v2919_v0  ;;  %v3788_v52 = vld [vmem:[#allocation2 + $0xc4] sm:$0xf]  ;;  %v3115_v54 = vor.u32 %v3888_v49, %v3112_v51 }
  0x2b   :  { %v3838_v5 = vld [vmem:[#allocation2 + $0x24c] sm:$0xf0]  ;;  %v3030_v6 = vld [vmem:[#allocation2 + $0x340] sm:$0xf]  ;;  %v2775_v10 = vor.u32 %v3806_v3, %v2774_v2  ;;  %1045 = vmatpush.bf16.msra.mxu3 %v3047_v1  ;;  %v2712_v53 = vld [vmem:[#allocation2 + $0xd0] sm:$0xf0] }
  0x2c   :  { %v3870_v7 = vld [vmem:[#allocation2 + $0x34c] sm:$0xf0]  ;;  %v2630_v11 = vld [vmem:[#allocation2 + $0x20] sm:$0xf]  ;;  %v2903_v13 = vor.u32 %v3838_v5, %v2902_v4  ;;  %1007 = vmatpush.bf16.msra.mxu0 %v2647_v8  ;;  %v2715_v55 = vor.u32 %v3788_v52, %v2712_v53  ;;  %v3820_v56 = vld [vmem:[#allocation2 + $0x1c4] sm:$0xf] }
  0x2d   :  { %v3770_v12 = vld [vmem:[#allocation2 + $0x2c] sm:$0xf0]  ;;  %v3031_v14 = vor.u32 %v3870_v7, %v3030_v6  ;;  %v2758_v15 = vld [vmem:[#allocation2 + $0x120] sm:$0xf]  ;;  %1020 = vmatpush.bf16.msra.mxu1 %v2775_v10  ;;  %v2840_v57 = vld [vmem:[#allocation2 + $0x1d0] sm:$0xf0] }
  0x2e   :  { %v3802_v16 = vld [vmem:[#allocation2 + $0x12c] sm:$0xf0]  ;;  %v2886_v17 = vld [vmem:[#allocation2 + $0x220] sm:$0xf]  ;;  %v2631_v21 = vor.u32 %v3770_v12, %v2630_v11  ;;  %1033 = vmatpush.bf16.msra.mxu2 %v2903_v13  ;;  %v3852_v58 = vld [vmem:[#allocation2 + $0x2c4] sm:$0xf]  ;;  %v2843_v59 = vor.u32 %v3820_v56, %v2840_v57 }
  0x2f   :  { %v3834_v18 = vld [vmem:[#allocation2 + $0x22c] sm:$0xf0]  ;;  %v3014_v19 = vld [vmem:[#allocation2 + $0x320] sm:$0xf]  ;;  %v2759_v22 = vor.u32 %v3802_v16, %v2758_v15  ;;  %1046 = vmatpush.bf16.msra.mxu3 %v3031_v14  ;;  %v2968_v60 = vld [vmem:[#allocation2 + $0x2d0] sm:$0xf0] }
  0x30   :  { %v3866_v20 = vld [vmem:[#allocation2 + $0x32c] sm:$0xf0]  ;;  %v2887_v23 = vor.u32 %v3834_v18, %v2886_v17  ;;  %1008 = vmatpush.bf16.msra.mxu0 %v2631_v21  ;;  %v4277_v26 = vld [vmem:[#allocation1 + $0x9] sm:$0xff]  ;;  %v3096_v62 = vld [vmem:[#allocation2 + $0x3d0] sm:$0xf0]  ;;  %v2971_v63 = vor.u32 %v3852_v58, %v2968_v60 }
  0x31   :  { %v3015_v24 = vor.u32 %v3866_v20, %v3014_v19  ;;  %v4279_v27 = vld [vmem:[#allocation1 + $0x12] sm:$0xff]  ;;  %1021 = vmatpush.bf16.msra.mxu1 %v2759_v22  ;;  %v4281_v28 = vld [vmem:[#allocation1 + $0x1b] sm:$0xff]  ;;  %v2614_v29 = vld [vmem:[#allocation2] sm:$0xf] }
  0x32   :  { %1034 = vmatpush.bf16.msra.mxu2 %v2887_v23  ;;  %143 = vst [vmem:[#allocation1] ss:$9 sm:$0xff] %v96_v9  ;;  %v3766_v30 = vld [vmem:[#allocation2 + $0xc] sm:$0xf0]  ;;  %v2742_v31 = vld [vmem:[#allocation2 + $0x100] sm:$0xf] }
  0x33   :  { %1047 = vmatpush.bf16.msra.mxu3 %v3015_v24  ;;  %v2615_v32 = vor.u32 %v3766_v30, %v2614_v29  ;;  %v3798_v33 = vld [vmem:[#allocation2 + $0x10c] sm:$0xf0]  ;;  %v2870_v34 = vld [vmem:[#allocation2 + $0x200] sm:$0xf]  ;;  %v3884_v61 = vld [vmem:[#allocation2 + $0x3c4] sm:$0xf] }
  0x34   :  { %v3830_v35 = vld [vmem:[#allocation2 + $0x20c] sm:$0xf0]  ;;  %v2743_v36 = vor.u32 %v3798_v33, %v2742_v31  ;;  %v2998_v38 = vld [vmem:[#allocation2 + $0x300] sm:$0xf]  ;;  %v3099_v0 = vor.u32 %v3884_v61, %v3096_v62  ;;  %v3784_v1 = vld [vmem:[#allocation2 + $0xa4] sm:$0xf] }
  0x35   :  { %v2871_v37 = vor.u32 %v3830_v35, %v2870_v34  ;;  %v3862_v39 = vld [vmem:[#allocation2 + $0x30c] sm:$0xf0]  ;;  %1009 = vmatpush.bf16.msra.mxu0 %v2615_v32  ;;  %v2696_v2 = vld [vmem:[#allocation2 + $0xb0] sm:$0xf0]  ;;  %v3816_v3 = vld [vmem:[#allocation2 + $0x1a4] sm:$0xf] }
  0x36   :  { %v2999_v41 = vor.u32 %v3862_v39, %v2998_v38  ;;  %1022 = vmatpush.bf16.msra.mxu1 %v2743_v36  ;;  %v2699_v4 = vor.u32 %v3784_v1, %v2696_v2  ;;  %v2824_v5 = vld [vmem:[#allocation2 + $0x1b0] sm:$0xf0]  ;;  %v3848_v6 = vld [vmem:[#allocation2 + $0x2a4] sm:$0xf]  ;;  %v189_v17 = vld [vmem:[%s4404_s2] sm:$0xf] }
  0x37   :  { %1035 = vmatpush.bf16.msra.mxu2 %v2871_v37  ;;  %v2952_v7 = vld [vmem:[#allocation2 + $0x2b0] sm:$0xf0]  ;;  %v2827_v8 = vor.u32 %v3816_v3, %v2824_v5  ;;  %v3880_v10 = vld [vmem:[#allocation2 + $0x3a4] sm:$0xf]  ;;  %v4205_v2 = vmov 839922192  }
  0x38   :  { %1048 = vmatpush.bf16.msra.mxu3 %v2999_v41  ;;  %v2955_v9 = vor.u32 %v3848_v6, %v2952_v7  ;;  %v3080_v11 = vld [vmem:[#allocation2 + $0x3b0] sm:$0xf0]  ;;  %v3780_v16 = vld [vmem:[#allocation2 + $0x84] sm:$0xf]  ;;  %v4294_v3 = vunpack.c.l.s4 %v4205_v2 }
  0x39   :  { %1054 = vmatpush.bf16.msrb.mxu0 %v2731_v45  ;;  %v4283_v12 = vld [vmem:[#allocation1] sm:$0xff]  ;;  %v4285_v13 = vld [vmem:[#allocation1 + $0x9] sm:$0xff]  ;;  %v4287_v14 = vld [vmem:[#allocation1 + $0x12] sm:$0xff]  ;;  %v3083_v15 = vor.u32 %v3880_v10, %v3080_v11 }
  0x3a   :  { %1067 = vmatpush.bf16.msrb.mxu1 %v2859_v46  ;;  %v4292_v18 = vld [vmem:[#allocation1 + $0x1b] sm:$0xff]  ;;  %v3812_v20 = vld [vmem:[#allocation2 + $0x184] sm:$0xf] }
  0x3b   :  { %1080 = vmatpush.bf16.msrb.mxu2 %v2987_v50  ;;  %v2680_v19 = vld [vmem:[#allocation2 + $0x90] sm:$0xf0]  ;;  %v3844_v23 = vld [vmem:[#allocation2 + $0x284] sm:$0xf]  ;;  %191 = vst [vmem:[#allocation1] ss:$9 sm:$0xff] %v189_v17  ;;  %v112_v17 = vpack.i.b16 %v4275_v25, %v4275_v25 }
  0x3c   :  { %1093 = vmatpush.bf16.msrb.mxu3 %v3115_v54  ;;  %v2683_v21 = vor.u32 %v3780_v16, %v2680_v19  ;;  %v2808_v22 = vld [vmem:[#allocation2 + $0x190] sm:$0xf0]  ;;  %v3876_v31 = vld [vmem:[#allocation2 + $0x384] sm:$0xf]  ;;  %v115_v19 = vpack.i.b16 %v4277_v26, %v4277_v26  ;;  %v152_v25 = vshrl.u32 %v4285_v13, 16  ;;  %v156_v26 = vshrl.u32 %v4287_v14, 16 }
  0x3d   :  { %1055 = vmatpush.bf16.msrb.mxu0 %v2715_v55  ;;  %v2936_v24 = vld [vmem:[#allocation2 + $0x290] sm:$0xf0]  ;;  %v2811_v29 = vor.u32 %v3812_v20, %v2808_v22  ;;  %v3776_v34 = vld [vmem:[#allocation2 + $0x64] sm:$0xf]  ;;  %v118_v20 = vpack.i.b16 %v4279_v27, %v4279_v27 }
  0x3e   :  { %1068 = vmatpush.bf16.msrb.mxu1 %v2843_v59  ;;  %v2939_v30 = vor.u32 %v3844_v23, %v2936_v24  ;;  %v3064_v32 = vld [vmem:[#allocation2 + $0x390] sm:$0xf0]  ;;  %v3808_v36 = vld [vmem:[#allocation2 + $0x164] sm:$0xf]  ;;  %v104_v24 = vunpack.c.0.s8 %v4294_v3 }
  0x3f   :  { %1081 = vmatpush.bf16.msrb.mxu2 %v2971_v63  ;;  %v3067_v33 = vor.u32 %v3876_v31, %v3064_v32  ;;  %v2664_v35 = vld [vmem:[#allocation2 + $0x70] sm:$0xf0]  ;;  %v3840_v39 = vld [vmem:[#allocation2 + $0x264] sm:$0xf]  ;;  %v160_v32 = vshrl.u32 %v4292_v18, 16 }
  0x40   :  { %1094 = vmatpush.bf16.msrb.mxu3 %v3099_v0  ;;  %v2667_v37 = vor.u32 %v3776_v34, %v2664_v35  ;;  %v2792_v38 = vld [vmem:[#allocation2 + $0x170] sm:$0xf0]  ;;  %v3872_v43 = vld [vmem:[#allocation2 + $0x364] sm:$0xf] }
  0x41   :  { %1056 = vmatpush.bf16.msrb.mxu0 %v2699_v4  ;;  %v2920_v40 = vld [vmem:[#allocation2 + $0x270] sm:$0xf0]  ;;  %v2795_v41 = vor.u32 %v3808_v36, %v2792_v38  ;;  %v3772_v45 = vld [vmem:[#allocation2 + $0x44] sm:$0xf]  ;;  %v117_v36 = vperm.slane %v115_v19, 0  ;;  %v161_v13 = vpack.i.b16 %v160_v32, %v160_v32 }
  0x42   :  { %1069 = vmatpush.bf16.msrb.mxu1 %v2827_v8  ;;  %v2923_v42 = vor.u32 %v3840_v39, %v2920_v40  ;;  %v3048_v44 = vld [vmem:[#allocation2 + $0x370] sm:$0xf0]  ;;  %v3804_v48 = vld [vmem:[#allocation2 + $0x144] sm:$0xf]  ;;  %v153_v39 = vpack.i.b16 %v152_v25, %v152_v25  ;;  %v157_v40 = vpack.i.b16 %v156_v26, %v156_v26 }
  0x43   :  { %1082 = vmatpush.bf16.msrb.mxu2 %v2955_v9  ;;  %v3051_v46 = vor.u32 %v3872_v43, %v3048_v44  ;;  %v2648_v47 = vld [vmem:[#allocation2 + $0x50] sm:$0xf0]  ;;  %v3836_v50 = vld [vmem:[#allocation2 + $0x244] sm:$0xf] }
  0x44   :  { %1095 = vmatpush.bf16.msrb.mxu3 %v3083_v15  ;;  %v2776_v49 = vld [vmem:[#allocation2 + $0x150] sm:$0xf0]  ;;  %v3868_v52 = vld [vmem:[#allocation2 + $0x344] sm:$0xf]  ;;  %v2651_v53 = vor.u32 %v3772_v45, %v2648_v47  ;;  %v155_v45 = vperm.slane %v153_v39, 0  ;;  %v163_v47 = vperm.slane %v161_v13, 0 }
  0x45   :  { %1057 = vmatpush.bf16.msrb.mxu0 %v2683_v21  ;;  %v2904_v51 = vld [vmem:[#allocation2 + $0x250] sm:$0xf0]  ;;  %v2779_v54 = vor.u32 %v3804_v48, %v2776_v49  ;;  %v3768_v56 = vld [vmem:[#allocation2 + $0x24] sm:$0xf]  ;;  %v148_v21 = vshrl.u32 %v4283_v12, 16  ;;  %v192_v49 = vld [vmem:[#allocation1] sm:$0xff] }
  0x46   :  { %1070 = vmatpush.bf16.msrb.mxu1 %v2811_v29  ;;  %v3032_v55 = vld [vmem:[#allocation2 + $0x350] sm:$0xf0]  ;;  %v2907_v57 = vor.u32 %v3836_v50, %v2904_v51  ;;  %v3800_v59 = vld [vmem:[#allocation2 + $0x124] sm:$0xf]  ;;  %v121_v29 = vpack.i.b16 %v4281_v28, %v4281_v28 }
  0x47   :  { %1083 = vmatpush.bf16.msrb.mxu2 %v2939_v30  ;;  %v2632_v58 = vld [vmem:[#allocation2 + $0x30] sm:$0xf0]  ;;  %v3035_v61 = vor.u32 %v3868_v52, %v3032_v55  ;;  %v3832_v62 = vld [vmem:[#allocation2 + $0x224] sm:$0xf]  ;;  %v149_v35 = vpack.i.b16 %v148_v21, %v148_v21 }
  0x48   :  { %1096 = vmatpush.bf16.msrb.mxu3 %v3067_v33  ;;  %v2760_v60 = vld [vmem:[#allocation2 + $0x130] sm:$0xf0]  ;;  %v3864_v0 = vld [vmem:[#allocation2 + $0x324] sm:$0xf]  ;;  %v2635_v4 = vor.u32 %v3768_v56, %v2632_v58  ;;  %v114_v33 = vperm.slane %v112_v17, 0  ;;  %v123_v28 = vperm.slane %v121_v29, 0  ;;  %v166_v58 = vunpack.c.l.bf16 %v155_v45 }
  0x49   :  { %1058 = vmatpush.bf16.msrb.mxu0 %v2667_v37  ;;  %v2888_v63 = vld [vmem:[#allocation2 + $0x230] sm:$0xf0]  ;;  %v2763_v5 = vor.u32 %v3800_v59, %v2760_v60  ;;  %v3764_v6 = vld [vmem:[#allocation2 + $0x4] sm:$0xf]  ;;  %v120_v37 = vperm.slane %v118_v20, 0  ;;  %v151_v18 = vperm.slane %v149_v35, 0  ;;  %v168_v60 = vunpack.c.l.bf16 %v163_v47 }
  0x4a   :  { %1071 = vmatpush.bf16.msrb.mxu1 %v2795_v41  ;;  %v3016_v1 = vld [vmem:[#allocation2 + $0x330] sm:$0xf0]  ;;  %v2891_v7 = vor.u32 %v3832_v62, %v2888_v63  ;;  %v3796_v9 = vld [vmem:[#allocation2 + $0x104] sm:$0xf]  ;;  %v125_v14 = vunpack.c.l.bf16 %v114_v33  ;;  %v126_v41 = vunpack.c.l.bf16 %v117_v36  ;;  %v128_v43 = vunpack.c.l.bf16 %v123_v28  ;;  %v194_v56 = vld [vmem:[#allocation1 + $0x12] sm:$0xff] }
  0x4b   :  { %1084 = vmatpush.bf16.msrb.mxu2 %v2923_v42  ;;  %v2616_v8 = vld [vmem:[#allocation2 + $0x10] sm:$0xf0]  ;;  %v3019_v11 = vor.u32 %v3864_v0, %v3016_v1  ;;  %v3828_v15 = vld [vmem:[#allocation2 + $0x204] sm:$0xf]  ;;  %v127_v42 = vunpack.c.l.bf16 %v120_v37  ;;  %v165_v48 = vunpack.c.l.bf16 %v151_v18  ;;  %v196_v62 = vpack.i.b16 %v192_v49, %v192_v49  ;;  %v2990_v45 = vld [vmem:[#allocation2 + $0x2e8] sm:$0xf] }
  0x4c   :  { %1097 = vmatpush.bf16.msrb.mxu3 %v3051_v46  ;;  %v2744_v10 = vld [vmem:[#allocation2 + $0x110] sm:$0xf0]  ;;  %v3860_v22 = vld [vmem:[#allocation2 + $0x304] sm:$0xf]  ;;  %v2619_v30 = vor.u32 %v3764_v6, %v2616_v8  ;;  %v159_v46 = vperm.slane %v157_v40, 0  ;;  %v202_v1 = vpack.i.b16 %v194_v56, %v194_v56 }
  0x4d   :  { %1059 = vmatpush.bf16.msrb.mxu0 %v2651_v53  ;;  %v2872_v16 = vld [vmem:[#allocation2 + $0x210] sm:$0xf0]  ;;  %v2747_v31 = vor.u32 %v3796_v9, %v2744_v10  ;;  %v193_v50 = vld [vmem:[#allocation1 + $0x9] sm:$0xff]  ;;  %v198_v9 = vperm.slane %v196_v62, 0 }
  0x4e   :  { %1072 = vmatpush.bf16.msrb.mxu1 %v2779_v54  ;;  %v3000_v23 = vld [vmem:[#allocation2 + $0x310] sm:$0xf0]  ;;  %v2875_v27 = vor.u32 %v3828_v15, %v2872_v16  ;;  %v167_v59 = vunpack.c.l.bf16 %v159_v46  ;;  %v199_v63 = vpack.i.b16 %v193_v50, %v193_v50  ;;  %v204_v16 = vperm.slane %v202_v1, 0  ;;  %v2734_v40 = vld [vmem:[#allocation2 + $0xe8] sm:$0xf] }
  0x4f   :  { %1085 = vmatpush.bf16.msrb.mxu2 %v2907_v57  ;;  %v3003_v12 = vor.u32 %v3860_v22, %v3000_v23  ;;  %v195_v57 = vld [vmem:[#allocation1 + $0x1b] sm:$0xff]  ;;  %v3118_v47 = vld [vmem:[#allocation2 + $0x3e8] sm:$0xf] }
  0x50   :  { %1098 = vmatpush.bf16.msrb.mxu3 %v3035_v61  ;;  %v205_v2 = vpack.i.b16 %v195_v57, %v195_v57  ;;  %v201_v10 = vperm.slane %v199_v63, 0  ;;  %v214_v35 = vunpack.c.l.bf16 %v204_v16  ;;  %v3859_v46 = vld [vmem:[#allocation2 + $0x2f4] sm:$0xf0]  ;;  %v2846_v63 = vld [vmem:[#allocation2 + $0x1c8] sm:$0xf] }
  0x51   :  { %1060 = vmatpush.bf16.msrb.mxu0 %v2635_v4  ;;  %v2974_v1 = vld [vmem:[#allocation2 + $0x2c8] sm:$0xf] }
  0x52   :  { %1073 = vmatpush.bf16.msrb.mxu1 %v2763_v5  ;;  %v207_v17 = vperm.slane %v205_v2, 0  ;;  %v3855_v2 = vld [vmem:[#allocation2 + $0x2d4] sm:$0xf0]  ;;  %v2958_v16 = vld [vmem:[#allocation2 + $0x2a8] sm:$0xf] }
  0x53   :  { %1086 = vmatpush.bf16.msrb.mxu2 %v2891_v7 }
  0x54   :  { %1099 = vmatpush.bf16.msrb.mxu3 %v3019_v11  ;;  %v215_v36 = vunpack.c.l.bf16 %v207_v17  ;;  %v3851_v17 = vld [vmem:[#allocation2 + $0x2b4] sm:$0xf0] }
  0x55   :  { %1061 = vmatpush.bf16.msrb.mxu0 %v2619_v30 }
  0x56   :  { %1074 = vmatpush.bf16.msrb.mxu1 %v2747_v31 }
  0x57   :  { %1087 = vmatpush.bf16.msrb.mxu2 %v2875_v27  ;;  %v212_v27 = vunpack.c.l.bf16 %v198_v9  ;;  %v2975_v9 = vor.u32 %v3855_v2, %v2974_v1  ;;  %v2894_v1 = vld [vmem:[#allocation2 + $0x228] sm:$0xf]  ;;  %v3835_v2 = vld [vmem:[#allocation2 + $0x234] sm:$0xf0] }
  0x58   :  { %1100 = vmatpush.bf16.msrb.mxu3 %v3003_v12  ;;  %v213_v12 = vunpack.c.l.bf16 %v201_v10 }
  0x89   :  { %v100_v34 = vpop.permute.xlu0 %99 }
  0x8a   :  { %v105_v38 = vperm.slane %v100_v34, %v104_v24 }
  0x8c   :  { %v124_v44 = vunpack.c.l.bf16 %v105_v38 }
  0x8e   :  { %v129_v51 = vmul.f32 %v125_v14, %v124_v44  ;;  %v130_v52 = vmul.f32 %v126_v41, %v124_v44  ;;  %v131_v53 = vmul.f32 %v127_v42, %v124_v44  ;;  %v132_v54 = vmul.f32 %v128_v43, %v124_v44  ;;  %v3795_v42 = vld [vmem:[#allocation2 + $0xf4] sm:$0xf0]  ;;  %v2862_v43 = vld [vmem:[#allocation2 + $0x1e8] sm:$0xf] }
  0x8f   :  { %v3827_v44 = vld [vmem:[#allocation2 + $0x1f4] sm:$0xf0] }
  0x90   :  { %v133_v3 = vpack.c.bf16 %v130_v52, %v129_v51  ;;  %v134_v4 = vpack.c.bf16 %v132_v54, %v131_v53  ;;  %v3891_v52 = vld [vmem:[#allocation2 + $0x3f4] sm:$0xf0]  ;;  %v2735_v53 = vor.u32 %v3795_v42, %v2734_v40  ;;  %v2863_v54 = vor.u32 %v3827_v44, %v2862_v43  ;;  %v2926_v40 = vld [vmem:[#allocation2 + $0x268] sm:$0xf] }
  0x91   :  { %v3119_v62 = vor.u32 %v3891_v52, %v3118_v47  ;;  %v2654_v43 = vld [vmem:[#allocation2 + $0x48] sm:$0xf]  ;;  %v3775_v44 = vld [vmem:[#allocation2 + $0x54] sm:$0xf0] }
  0x92   :  { %v137_v55 = vpop.permute.xlu0 %136  ;;  %v175_v19 = vunpack.c.l.bf16 %v133_v3  ;;  %v176_v20 = vunpack.c.h.bf16 %v133_v3  ;;  %v177_v21 = vunpack.c.l.bf16 %v134_v4  ;;  %v178_v22 = vunpack.c.h.bf16 %v134_v4  ;;  %v3102_v3 = vld [vmem:[#allocation2 + $0x3c8] sm:$0xf]  ;;  %v3887_v4 = vld [vmem:[#allocation2 + $0x3d4] sm:$0xf0] }
  0x93   :  { %v142_v61 = vperm.slane %v137_v55, %v104_v24  ;;  %v3103_v10 = vor.u32 %v3887_v4, %v3102_v3  ;;  %v2782_v47 = vld [vmem:[#allocation2 + $0x148] sm:$0xf]  ;;  %v3871_v52 = vld [vmem:[#allocation2 + $0x354] sm:$0xf0] }
  0x94   :  { %v3022_v3 = vld [vmem:[#allocation2 + $0x328] sm:$0xf]  ;;  %v3867_v4 = vld [vmem:[#allocation2 + $0x334] sm:$0xf0] }
  0x95   :  { %v164_v0 = vunpack.c.l.bf16 %v142_v61  ;;  %v2991_v61 = vor.u32 %v3859_v46, %v2990_v45 }
  0x97   :  { %v169_v5 = vmul.f32 %v165_v48, %v164_v0  ;;  %v170_v6 = vmul.f32 %v166_v58, %v164_v0  ;;  %v171_v7 = vmul.f32 %v167_v59, %v164_v0  ;;  %v172_v8 = vmul.f32 %v168_v60, %v164_v0  ;;  %v2718_v59 = vld [vmem:[#allocation2 + $0xc8] sm:$0xf]  ;;  %v3791_v60 = vld [vmem:[#allocation2 + $0xd4] sm:$0xf0] }
  0x98   :  { %v3823_v0 = vld [vmem:[#allocation2 + $0x1d4] sm:$0xf0] }
  0x99   :  { %v173_v11 = vpack.c.bf16 %v170_v6, %v169_v5  ;;  %v174_v15 = vpack.c.bf16 %v172_v8, %v171_v7  ;;  %v2719_v5 = vor.u32 %v3791_v60, %v2718_v59  ;;  %v2847_v6 = vor.u32 %v3823_v0, %v2846_v63  ;;  %v2702_v7 = vld [vmem:[#allocation2 + $0xa8] sm:$0xf]  ;;  %v3787_v8 = vld [vmem:[#allocation2 + $0xb4] sm:$0xf0] }
  0x9a   :  { %v2638_v59 = vld [vmem:[#allocation2 + $0x28] sm:$0xf]  ;;  %v3771_v60 = vld [vmem:[#allocation2 + $0x34] sm:$0xf0] }
  0x9b   :  { %v179_v23 = vunpack.c.l.bf16 %v173_v11  ;;  %v180_v24 = vunpack.c.h.bf16 %v173_v11  ;;  %v181_v29 = vunpack.c.l.bf16 %v174_v15  ;;  %v182_v30 = vunpack.c.h.bf16 %v174_v15  ;;  %v2830_v11 = vld [vmem:[#allocation2 + $0x1a8] sm:$0xf]  ;;  %v3819_v15 = vld [vmem:[#allocation2 + $0x1b4] sm:$0xf0] }
  0x9c   :  { %v2766_v63 = vld [vmem:[#allocation2 + $0x128] sm:$0xf]  ;;  %v3803_v0 = vld [vmem:[#allocation2 + $0x134] sm:$0xf0] }
  0x9d   :  { %v183_v31 = vadd.f32 %v179_v23, %v175_v19  ;;  %v184_v25 = vadd.f32 %v180_v24, %v176_v20  ;;  %v185_v26 = vadd.f32 %v181_v29, %v177_v21  ;;  %v186_v32 = vadd.f32 %v182_v30, %v178_v22  ;;  %v3086_v19 = vld [vmem:[#allocation2 + $0x3a8] sm:$0xf]  ;;  %v3883_v20 = vld [vmem:[#allocation2 + $0x3b4] sm:$0xf0] }
  0x9e   :  { %v2703_v21 = vor.u32 %v3787_v8, %v2702_v7  ;;  %v2831_v22 = vor.u32 %v3819_v15, %v2830_v11  ;;  %v2686_v23 = vld [vmem:[#allocation2 + $0x88] sm:$0xf]  ;;  %v3783_v24 = vld [vmem:[#allocation2 + $0x94] sm:$0xf0]  ;;  %v2959_v29 = vor.u32 %v3851_v17, %v2958_v16  ;;  %v3087_v30 = vor.u32 %v3883_v20, %v3086_v19 }
  0x9f   :  { %v187_v33 = vpack.c.bf16 %v184_v25, %v183_v31  ;;  %v188_v34 = vpack.c.bf16 %v186_v32, %v185_v26  ;;  %v2814_v31 = vld [vmem:[#allocation2 + $0x188] sm:$0xf]  ;;  %v3815_v25 = vld [vmem:[#allocation2 + $0x194] sm:$0xf0]  ;;  %v2767_v7 = vor.u32 %v3803_v0, %v2766_v63  ;;  %v2895_v11 = vor.u32 %v3835_v2, %v2894_v1  ;;  %v3813_v63 = vld [vmem:[#allocation2 + $0x18c] sm:$0xf] }
  0xa0   :  { %v2942_v26 = vld [vmem:[#allocation2 + $0x288] sm:$0xf]  ;;  %v3847_v32 = vld [vmem:[#allocation2 + $0x294] sm:$0xf0]  ;;  %v3023_v15 = vor.u32 %v3867_v4, %v3022_v3  ;;  %v2816_v0 = vld [vmem:[#allocation2 + $0x198] sm:$0xf0] }
  0xa1   :  { %v208_v37 = vunpack.c.l.bf16 %v187_v33  ;;  %v209_v28 = vunpack.c.h.bf16 %v187_v33  ;;  %v210_v38 = vunpack.c.l.bf16 %v188_v34  ;;  %v211_v39 = vunpack.c.h.bf16 %v188_v34  ;;  %v3767_v8 = vld [vmem:[#allocation2 + $0x14] sm:$0xf0]  ;;  %v2878_v16 = vld [vmem:[#allocation2 + $0x208] sm:$0xf]  ;;  %v3845_v1 = vld [vmem:[#allocation2 + $0x28c] sm:$0xf] }
  0xa2   :  { %v2687_v33 = vor.u32 %v3783_v24, %v2686_v23  ;;  %v2815_v34 = vor.u32 %v3815_v25, %v2814_v31  ;;  %v3831_v17 = vld [vmem:[#allocation2 + $0x214] sm:$0xf0]  ;;  %v3006_v19 = vld [vmem:[#allocation2 + $0x308] sm:$0xf]  ;;  %v3825_v23 = vld [vmem:[#allocation2 + $0x1ec] sm:$0xf] }
  0xa3   :  { %v216_v13 = vadd.f32 %v212_v27, %v208_v37  ;;  %v217_v14 = vadd.f32 %v213_v12, %v209_v28  ;;  %v218_v18 = vadd.f32 %v214_v35, %v210_v38  ;;  %v219_v41 = vadd.f32 %v215_v36, %v211_v39  ;;  %v3070_v27 = vld [vmem:[#allocation2 + $0x388] sm:$0xf]  ;;  %v3879_v12 = vld [vmem:[#allocation2 + $0x394] sm:$0xf0]  ;;  %v2864_v24 = vld [vmem:[#allocation2 + $0x1f8] sm:$0xf0] }
  0xa4   :  { %v2670_v35 = vld [vmem:[#allocation2 + $0x68] sm:$0xf]  ;;  %v3779_v36 = vld [vmem:[#allocation2 + $0x74] sm:$0xf0]  ;;  %v2943_v37 = vor.u32 %v3847_v32, %v2942_v26  ;;  %v3071_v28 = vor.u32 %v3879_v12, %v3070_v27  ;;  %v2992_v25 = vld [vmem:[#allocation2 + $0x2f8] sm:$0xf0]  ;;  %v2879_v27 = vor.u32 %v3831_v17, %v2878_v16 }
  0xa5   :  { %v226_v48 = vmax.f32 %v216_v13, 0.0  ;;  %v227_v49 = vmax.f32 %v217_v14, 0.0  ;;  %v228_v50 = vmax.f32 %v218_v18, 0.0  ;;  %v229_v51 = vmax.f32 %v219_v41, 0.0  ;;  %v2798_v38 = vld [vmem:[#allocation2 + $0x168] sm:$0xf] }
  0xa6   :  { %v3811_v39 = vld [vmem:[#allocation2 + $0x174] sm:$0xf0]  ;;  %v3054_v14 = vld [vmem:[#allocation2 + $0x368] sm:$0xf]  ;;  %v2671_v41 = vor.u32 %v3779_v36, %v2670_v35  ;;  %v3889_v26 = vld [vmem:[#allocation2 + $0x3ec] sm:$0xf] }
  0xa7   :  { %v4309_v55 = vpack.c.bf16 %v226_v48, %v226_v48  ;;  %v4311_v56 = vpack.c.bf16 %v227_v49, %v227_v49  ;;  %v4313_v57 = vpack.c.bf16 %v228_v50, %v228_v50  ;;  %v4315_v58 = vpack.c.bf16 %v229_v51, %v229_v51  ;;  %v3843_v13 = vld [vmem:[#allocation2 + $0x274] sm:$0xf0]  ;;  %v2910_v49 = vld [vmem:[#allocation2 + $0x248] sm:$0xf]  ;;  %v3120_v32 = vld [vmem:[#allocation2 + $0x3f8] sm:$0xf0] }
  0xa8   :  { %v3875_v18 = vld [vmem:[#allocation2 + $0x374] sm:$0xf0]  ;;  %v2799_v42 = vor.u32 %v3811_v39, %v2798_v38  ;;  %v2927_v45 = vor.u32 %v3843_v13, %v2926_v40  ;;  %v3038_v51 = vld [vmem:[#allocation2 + $0x348] sm:$0xf]  ;;  %v3789_v35 = vld [vmem:[#allocation2 + $0xcc] sm:$0xf] }
  0xa9   :  { %1010 = vmatmul.bf16.vlgmr.msra.gmra.mxu0 %v4309_v55  ;;  %1023 = vmatmul.bf16.vlgmr.msra.gmra.mxu1 %v4311_v56  ;;  %v3055_v46 = vor.u32 %v3875_v18, %v3054_v14  ;;  %v3807_v48 = vld [vmem:[#allocation2 + $0x154] sm:$0xf0]  ;;  %v2720_v36 = vld [vmem:[#allocation2 + $0xd8] sm:$0xf0]  ;;  %v3821_v38 = vld [vmem:[#allocation2 + $0x1cc] sm:$0xf] }
  0xaa   :  { %1036 = vmatmul.bf16.vlgmr.msra.gmra.mxu2 %v4313_v57  ;;  %1049 = vmatmul.bf16.vlgmr.msra.gmra.mxu3 %v4315_v58  ;;  %v3839_v50 = vld [vmem:[#allocation2 + $0x254] sm:$0xf0]  ;;  %v2848_v39 = vld [vmem:[#allocation2 + $0x1d8] sm:$0xf0]  ;;  %v3853_v40 = vld [vmem:[#allocation2 + $0x2cc] sm:$0xf] }
  0xab   :  { %1106 = vmatpush.bf16.msra.mxu0 %v2735_v53  ;;  %1119 = vmatpush.bf16.msra.mxu1 %v2863_v54  ;;  %v2655_v53 = vor.u32 %v3775_v44, %v2654_v43  ;;  %v2783_v54 = vor.u32 %v3807_v48, %v2782_v47  ;;  %v3863_v20 = vld [vmem:[#allocation2 + $0x314] sm:$0xf0]  ;;  %v2976_v13 = vld [vmem:[#allocation2 + $0x2d8] sm:$0xf0]  ;;  %v3885_v14 = vld [vmem:[#allocation2 + $0x3cc] sm:$0xf] }
  0xac   :  { %1132 = vmatpush.bf16.msra.mxu2 %v2991_v61  ;;  %1145 = vmatpush.bf16.msra.mxu3 %v3119_v62  ;;  %v2911_v61 = vor.u32 %v3839_v50, %v2910_v49  ;;  %v3039_v62 = vor.u32 %v3871_v52, %v3038_v51  ;;  %v3007_v12 = vor.u32 %v3863_v20, %v3006_v19  ;;  %v3104_v18 = vld [vmem:[#allocation2 + $0x3d8] sm:$0xf0]  ;;  %v3785_v43 = vld [vmem:[#allocation2 + $0xac] sm:$0xf] }
  0xad   :  { %v2704_v44 = vld [vmem:[#allocation2 + $0xb8] sm:$0xf0]  ;;  %v3817_v47 = vld [vmem:[#allocation2 + $0x1ac] sm:$0xf] }
  0xae   :  { %v2832_v48 = vld [vmem:[#allocation2 + $0x1b8] sm:$0xf0]  ;;  %v3849_v49 = vld [vmem:[#allocation2 + $0x2ac] sm:$0xf] }
  0xaf   :  { %1107 = vmatpush.bf16.msra.mxu0 %v2719_v5  ;;  %1120 = vmatpush.bf16.msra.mxu1 %v2847_v6  ;;  %v2622_v5 = vld [vmem:[#allocation2 + $0x8] sm:$0xf]  ;;  %v2639_v6 = vor.u32 %v3771_v60, %v2638_v59  ;;  %v2960_v50 = vld [vmem:[#allocation2 + $0x2b8] sm:$0xf0]  ;;  %v3881_v51 = vld [vmem:[#allocation2 + $0x3ac] sm:$0xf] }
  0xb0   :  { %1133 = vmatpush.bf16.msra.mxu2 %v2975_v9  ;;  %1146 = vmatpush.bf16.msra.mxu3 %v3103_v10  ;;  %v2750_v9 = vld [vmem:[#allocation2 + $0x108] sm:$0xf]  ;;  %v3799_v10 = vld [vmem:[#allocation2 + $0x114] sm:$0xf0]  ;;  %v3088_v52 = vld [vmem:[#allocation2 + $0x3b8] sm:$0xf0] }
  0xb1   :  { %v2751_v31 = vor.u32 %v3799_v10, %v2750_v9  ;;  %v3781_v59 = vld [vmem:[#allocation2 + $0x8c] sm:$0xf]  ;;  %v2688_v60 = vld [vmem:[#allocation2 + $0x98] sm:$0xf0] }
  0xb2   :  { %v2944_v2 = vld [vmem:[#allocation2 + $0x298] sm:$0xf0]  ;;  %v3877_v3 = vld [vmem:[#allocation2 + $0x38c] sm:$0xf] }
  0xb3   :  { %1108 = vmatpush.bf16.msra.mxu0 %v2703_v21  ;;  %1121 = vmatpush.bf16.msra.mxu1 %v2831_v22  ;;  %v3793_v21 = vld [vmem:[#allocation2 + $0xec] sm:$0xf]  ;;  %v2736_v22 = vld [vmem:[#allocation2 + $0xf8] sm:$0xf0]  ;;  %v2947_v9 = vor.u32 %v3845_v1, %v2944_v2 }
  0xb4   :  { %1134 = vmatpush.bf16.msra.mxu2 %v2959_v29  ;;  %1147 = vmatpush.bf16.msra.mxu3 %v3087_v30  ;;  %v3857_v29 = vld [vmem:[#allocation2 + $0x2ec] sm:$0xf]  ;;  %v2623_v30 = vor.u32 %v3767_v8, %v2622_v5  ;;  %v3072_v4 = vld [vmem:[#allocation2 + $0x398] sm:$0xf0]  ;;  %v2691_v5 = vor.u32 %v3781_v59, %v2688_v60  ;;  %v3366_v59 = vld [vmem:[#allocation5 + $0x1e0] sm:$0xf] }
  0xb5   :  { %v2672_v8 = vld [vmem:[#allocation2 + $0x78] sm:$0xf0]  ;;  %v3075_v10 = vor.u32 %v3877_v3, %v3072_v4  ;;  %v3841_v16 = vld [vmem:[#allocation2 + $0x26c] sm:$0xf]  ;;  %v3954_v60 = vld [vmem:[#allocation5 + $0x1ec] sm:$0xf0] }
  0xb6   :  { %v2928_v17 = vld [vmem:[#allocation2 + $0x278] sm:$0xf0]  ;;  %v3873_v19 = vld [vmem:[#allocation2 + $0x36c] sm:$0xf]  ;;  %v3367_v2 = vor.u32 %v3954_v60, %v3366_v59  ;;  %v3222_v3 = vld [vmem:[#allocation5 + $0xc0] sm:$0xf] }
  0xb7   :  { %1109 = vmatpush.bf16.msra.mxu0 %v2687_v33  ;;  %1122 = vmatpush.bf16.msra.mxu1 %v2815_v34  ;;  %v2739_v33 = vor.u32 %v3793_v21, %v2736_v22  ;;  %v2867_v34 = vor.u32 %v3825_v23, %v2864_v24  ;;  %v3056_v20 = vld [vmem:[#allocation2 + $0x378] sm:$0xf0]  ;;  %v3773_v23 = vld [vmem:[#allocation2 + $0x4c] sm:$0xf]  ;;  %v3918_v4 = vld [vmem:[#allocation5 + $0xcc] sm:$0xf0] }
  0xb8   :  { %1135 = vmatpush.bf16.msra.mxu2 %v2943_v37  ;;  %1148 = vmatpush.bf16.msra.mxu3 %v3071_v28  ;;  %v2995_v37 = vor.u32 %v3857_v29, %v2992_v25  ;;  %v3123_v28 = vor.u32 %v3889_v26, %v3120_v32  ;;  %v2656_v24 = vld [vmem:[#allocation2 + $0x58] sm:$0xf0]  ;;  %v2931_v29 = vor.u32 %v3841_v16, %v2928_v17  ;;  %v3837_v26 = vld [vmem:[#allocation2 + $0x24c] sm:$0xf]  ;;  %v3944_v59 = vld [vmem:[#allocation5 + $0x1a4] sm:$0xf] }
  0xb9   :  { %1062 = vmatmul.bf16.vlgmr.msrb.gmra.mxu0 %v4309_v55  ;;  %1075 = vmatmul.bf16.vlgmr.msrb.gmra.mxu1 %v4311_v56  ;;  %v2784_v25 = vld [vmem:[#allocation2 + $0x158] sm:$0xf0] }
  0xba   :  { %1088 = vmatmul.bf16.vlgmr.msrb.gmra.mxu2 %v4313_v57  ;;  %1101 = vmatmul.bf16.vlgmr.msrb.gmra.mxu3 %v4315_v58  ;;  %v2912_v32 = vld [vmem:[#allocation2 + $0x258] sm:$0xf0] }
  0xbb   :  { %1110 = vmatpush.bf16.msra.mxu0 %v2671_v41  ;;  %1123 = vmatpush.bf16.msra.mxu1 %v2799_v42  ;;  %v2723_v41 = vor.u32 %v3789_v35, %v2720_v36  ;;  %v2851_v42 = vor.u32 %v3821_v38, %v2848_v39  ;;  %v3769_v35 = vld [vmem:[#allocation2 + $0x2c] sm:$0xf]  ;;  %v2640_v36 = vld [vmem:[#allocation2 + $0x38] sm:$0xf0] }
  0xbc   :  { %1136 = vmatpush.bf16.msra.mxu2 %v2927_v45  ;;  %1149 = vmatpush.bf16.msra.mxu3 %v3055_v46  ;;  %v2979_v45 = vor.u32 %v3853_v40, %v2976_v13  ;;  %v3107_v46 = vor.u32 %v3885_v14, %v3104_v18  ;;  %v3801_v38 = vld [vmem:[#allocation2 + $0x12c] sm:$0xf]  ;;  %v2768_v39 = vld [vmem:[#allocation2 + $0x138] sm:$0xf0] }
  0xbd   :  { %v3833_v40 = vld [vmem:[#allocation2 + $0x22c] sm:$0xf]  ;;  %v2896_v13 = vld [vmem:[#allocation2 + $0x238] sm:$0xf0] }
  0xbe   :  { %v3865_v14 = vld [vmem:[#allocation2 + $0x32c] sm:$0xf]  ;;  %v3024_v18 = vld [vmem:[#allocation2 + $0x338] sm:$0xf0] }
  0xbf   :  { %1111 = vmatpush.bf16.msra.mxu0 %v2655_v53  ;;  %1124 = vmatpush.bf16.msra.mxu1 %v2783_v54  ;;  %v2707_v53 = vor.u32 %v3785_v43, %v2704_v44  ;;  %v2835_v54 = vor.u32 %v3817_v47, %v2832_v48  ;;  %v3765_v43 = vld [vmem:[#allocation2 + $0xc] sm:$0xf]  ;;  %v2624_v44 = vld [vmem:[#allocation2 + $0x18] sm:$0xf0]  ;;  %v3027_v47 = vor.u32 %v3865_v14, %v3024_v18  ;;  %v3926_v14 = vld [vmem:[#allocation5 + $0x10c] sm:$0xf0] }
  0xc0   :  { %1137 = vmatpush.bf16.msra.mxu2 %v2911_v61  ;;  %1150 = vmatpush.bf16.msra.mxu3 %v3039_v62  ;;  %v2963_v61 = vor.u32 %v3849_v49, %v2960_v50  ;;  %v3091_v62 = vor.u32 %v3881_v51, %v3088_v52  ;;  %v2752_v48 = vld [vmem:[#allocation2 + $0x118] sm:$0xf0]  ;;  %v3829_v49 = vld [vmem:[#allocation2 + $0x20c] sm:$0xf]  ;;  %v3920_v18 = vld [vmem:[#allocation5 + $0xe4] sm:$0xf] }
  0xc1   :  { %v2880_v50 = vld [vmem:[#allocation2 + $0x218] sm:$0xf0]  ;;  %v3861_v51 = vld [vmem:[#allocation2 + $0x30c] sm:$0xf] }
  0xc2   :  { %v3008_v52 = vld [vmem:[#allocation2 + $0x318] sm:$0xf0] }
  0xc3   :  { %1112 = vmatpush.bf16.msra.mxu0 %v2639_v6  ;;  %1125 = vmatpush.bf16.msra.mxu1 %v2767_v7  ;;  %v2819_v6 = vor.u32 %v3813_v63, %v2816_v0  ;;  %v3777_v7 = vld [vmem:[#allocation2 + $0x6c] sm:$0xf]  ;;  %v2883_v63 = vor.u32 %v3829_v49, %v2880_v50  ;;  %v3011_v0 = vor.u32 %v3861_v51, %v3008_v52  ;;  %v3948_v49 = vld [vmem:[#allocation5 + $0x1c4] sm:$0xf]  ;;  %v3352_v50 = vld [vmem:[#allocation5 + $0x1d0] sm:$0xf0] }
  0xc4   :  { %1138 = vmatpush.bf16.msra.mxu2 %v2895_v11  ;;  %1151 = vmatpush.bf16.msra.mxu3 %v3023_v15  ;;  %v3809_v11 = vld [vmem:[#allocation2 + $0x16c] sm:$0xf]  ;;  %v2800_v15 = vld [vmem:[#allocation2 + $0x178] sm:$0xf0]  ;;  %v2675_v21 = vor.u32 %v3777_v7, %v2672_v8  ;;  %v3223_v7 = vor.u32 %v3918_v4, %v3222_v3  ;;  %v3355_v52 = vor.u32 %v3948_v49, %v3352_v50  ;;  %v1212_v4 = vld [vmem:[%s4406_s4] sm:$0xf] }
  0xc5   :  { %v2803_v22 = vor.u32 %v3809_v11, %v2800_v15  ;;  %v3334_v11 = vld [vmem:[#allocation5 + $0x1a0] sm:$0xf]  ;;  %v3946_v15 = vld [vmem:[#allocation5 + $0x1ac] sm:$0xf0]  ;;  %1214 = vst [vmem:[#allocation1] ss:$9 sm:$0xff] %v1212_v4 }
  0xc6   :  { %v3335_v17 = vor.u32 %v3946_v15, %v3334_v11  ;;  %v3904_v11 = vld [vmem:[#allocation5 + $0x64] sm:$0xf]  ;;  %v3176_v15 = vld [vmem:[#allocation5 + $0x70] sm:$0xf0]  ;;  %v3542_v4 = vld [vmem:[#allocation5 + $0x340] sm:$0xf] }
  0xc7   :  { %1113 = vmatpush.bf16.msra.mxu0 %v2623_v30  ;;  %1126 = vmatpush.bf16.msra.mxu1 %v2751_v31  ;;  %v3059_v30 = vor.u32 %v3873_v19, %v3056_v20  ;;  %v3805_v31 = vld [vmem:[#allocation2 + $0x14c] sm:$0xf]  ;;  %v3190_v19 = vld [vmem:[#allocation5 + $0x80] sm:$0xf]  ;;  %v3910_v20 = vld [vmem:[#allocation5 + $0x8c] sm:$0xf0] }
  0xc8   :  { %1139 = vmatpush.bf16.msra.mxu2 %v2879_v27  ;;  %1152 = vmatpush.bf16.msra.mxu3 %v3007_v12  ;;  %v3869_v27 = vld [vmem:[#allocation2 + $0x34c] sm:$0xf]  ;;  %v3040_v12 = vld [vmem:[#allocation2 + $0x358] sm:$0xf0]  ;;  %v3924_v49 = vld [vmem:[#allocation5 + $0x104] sm:$0xf] }
  0xc9   :  { %v3256_v50 = vld [vmem:[#allocation5 + $0x110] sm:$0xf0] }
  0xca   :  { %1114 = vmatmul.bf16.vlgmr.msra.gmra.mxu0 %v4309_v55  ;;  %1127 = vmatmul.bf16.vlgmr.msra.gmra.mxu1 %v4311_v56 }
  0xcb   :  { %1158 = vmatpush.bf16.msrb.mxu0 %v2739_v33  ;;  %1171 = vmatpush.bf16.msrb.mxu1 %v2867_v34  ;;  %v2659_v33 = vor.u32 %v3773_v23, %v2656_v24  ;;  %v2787_v34 = vor.u32 %v3805_v31, %v2784_v25  ;;  %v3906_v24 = vld [vmem:[#allocation5 + $0x6c] sm:$0xf0]  ;;  %v3158_v31 = vld [vmem:[#allocation5 + $0x40] sm:$0xf] }
  0xcc   :  { %1184 = vmatpush.bf16.msrb.mxu2 %v2995_v37  ;;  %1197 = vmatpush.bf16.msrb.mxu3 %v3123_v28  ;;  %v2915_v37 = vor.u32 %v3837_v26, %v2912_v32  ;;  %v3043_v28 = vor.u32 %v3869_v27, %v3040_v12  ;;  %v3902_v25 = vld [vmem:[#allocation5 + $0x4c] sm:$0xf0]  ;;  %v3286_v26 = vld [vmem:[#allocation5 + $0x140] sm:$0xf] }
  0xcd   :  { %1140 = vmatmul.bf16.vlgmr.msra.gmra.mxu2 %v4313_v57  ;;  %1153 = vmatmul.bf16.vlgmr.msra.gmra.mxu3 %v4315_v58  ;;  %v3934_v32 = vld [vmem:[#allocation5 + $0x14c] sm:$0xf0]  ;;  %v3159_v27 = vor.u32 %v3902_v25, %v3158_v31  ;;  %v3288_v25 = vld [vmem:[#allocation5 + $0x150] sm:$0xf0] }
  0xce   :  { %v3287_v12 = vor.u32 %v3934_v32, %v3286_v26 }
  0xcf   :  { %1159 = vmatpush.bf16.msrb.mxu0 %v2723_v41  ;;  %1172 = vmatpush.bf16.msrb.mxu1 %v2851_v42  ;;  %v2643_v41 = vor.u32 %v3769_v35, %v2640_v36  ;;  %v2771_v42 = vor.u32 %v3801_v38, %v2768_v39  ;;  %v3270_v35 = vld [vmem:[#allocation5 + $0x120] sm:$0xf]  ;;  %v3894_v39 = vld [vmem:[#allocation5 + $0xc] sm:$0xf0] }
  0xd0   :  { %1185 = vmatpush.bf16.msrb.mxu2 %v2979_v45  ;;  %1198 = vmatpush.bf16.msrb.mxu3 %v3107_v46  ;;  %v3797_v45 = vld [vmem:[#allocation2 + $0x10c] sm:$0xf]  ;;  %v2899_v46 = vor.u32 %v3833_v40, %v2896_v13  ;;  %v3126_v38 = vld [vmem:[#allocation5] sm:$0xf] }
  0xd1   :  { %v3254_v40 = vld [vmem:[#allocation5 + $0x100] sm:$0xf]  ;;  %v3127_v13 = vor.u32 %v3894_v39, %v3126_v38 }
  0xd3   :  { %1160 = vmatpush.bf16.msrb.mxu0 %v2707_v53  ;;  %1173 = vmatpush.bf16.msrb.mxu1 %v2835_v54  ;;  %v3238_v53 = vld [vmem:[#allocation5 + $0xe0] sm:$0xf]  ;;  %v3922_v54 = vld [vmem:[#allocation5 + $0xec] sm:$0xf0] }
  0xd4   :  { %1186 = vmatpush.bf16.msrb.mxu2 %v2963_v61  ;;  %1199 = vmatpush.bf16.msrb.mxu3 %v3091_v62  ;;  %v2627_v61 = vor.u32 %v3765_v43, %v2624_v44  ;;  %v2755_v62 = vor.u32 %v3797_v45, %v2752_v48  ;;  %v3239_v1 = vor.u32 %v3922_v54, %v3238_v53  ;;  %v3952_v44 = vld [vmem:[#allocation5 + $0x1e4] sm:$0xf]  ;;  %v3368_v45 = vld [vmem:[#allocation5 + $0x1f0] sm:$0xf0] }
  0xd5   :  { %v3224_v48 = vld [vmem:[#allocation5 + $0xd0] sm:$0xf0]  ;;  %v3912_v53 = vld [vmem:[#allocation5 + $0xa4] sm:$0xf] }
  0xd6   :  { %v3208_v54 = vld [vmem:[#allocation5 + $0xb0] sm:$0xf0] }
  0xd7   :  { %1161 = vmatpush.bf16.msrb.mxu0 %v2691_v5  ;;  %1174 = vmatpush.bf16.msrb.mxu1 %v2819_v6  ;;  %v3350_v5 = vld [vmem:[#allocation5 + $0x1c0] sm:$0xf]  ;;  %v3950_v6 = vld [vmem:[#allocation5 + $0x1cc] sm:$0xf0]  ;;  %v3211_v60 = vor.u32 %v3912_v53, %v3208_v54 }
  0xd8   :  { %1187 = vmatpush.bf16.msrb.mxu2 %v2947_v9  ;;  %1200 = vmatpush.bf16.msrb.mxu3 %v3075_v10  ;;  %v3351_v8 = vor.u32 %v3950_v6, %v3350_v5  ;;  %v3206_v9 = vld [vmem:[#allocation5 + $0xa0] sm:$0xf]  ;;  %v3914_v10 = vld [vmem:[#allocation5 + $0xac] sm:$0xf0] }
  0xd9   :  { %v3207_v16 = vor.u32 %v3914_v10, %v3206_v9  ;;  %v3494_v6 = vld [vmem:[#allocation5 + $0x2e0] sm:$0xf]  ;;  %v4018_v10 = vld [vmem:[#allocation5 + $0x3ec] sm:$0xf0] }
  0xdb   :  { %1162 = vmatpush.bf16.msrb.mxu0 %v2675_v21  ;;  %1175 = vmatpush.bf16.msrb.mxu1 %v2803_v22  ;;  %v3318_v21 = vld [vmem:[#allocation5 + $0x180] sm:$0xf]  ;;  %v3942_v22 = vld [vmem:[#allocation5 + $0x18c] sm:$0xf0] }
  0xdc   :  { %1188 = vmatpush.bf16.msrb.mxu2 %v2931_v29  ;;  %1201 = vmatpush.bf16.msrb.mxu3 %v3059_v30  ;;  %v3319_v23 = vor.u32 %v3942_v22, %v3318_v21  ;;  %v3302_v29 = vld [vmem:[#allocation5 + $0x160] sm:$0xf]  ;;  %v3938_v30 = vld [vmem:[#allocation5 + $0x16c] sm:$0xf0] }
  0xdd   :  { %v3478_v22 = vld [vmem:[#allocation5 + $0x2c0] sm:$0xf] }
  0xdf   :  { %1163 = vmatpush.bf16.msrb.mxu0 %v2659_v33  ;;  %1176 = vmatpush.bf16.msrb.mxu1 %v2787_v34  ;;  %v3142_v33 = vld [vmem:[#allocation5 + $0x20] sm:$0xf]  ;;  %v3898_v34 = vld [vmem:[#allocation5 + $0x2c] sm:$0xf0] }
  0xe0   :  { %1189 = vmatpush.bf16.msrb.mxu2 %v2915_v37  ;;  %1202 = vmatpush.bf16.msrb.mxu3 %v3043_v28  ;;  %v3143_v36 = vor.u32 %v3898_v34, %v3142_v33  ;;  %v3930_v37 = vld [vmem:[#allocation5 + $0x12c] sm:$0xf0]  ;;  %v3590_v34 = vld [vmem:[#allocation5 + $0x3a0] sm:$0xf] }
  0xe1   :  { %v3271_v28 = vor.u32 %v3930_v37, %v3270_v35  ;;  %v3978_v33 = vld [vmem:[#allocation5 + $0x2ac] sm:$0xf0]  ;;  %v3896_v37 = vld [vmem:[#allocation5 + $0x24] sm:$0xf] }
  0xe3   :  { %1164 = vmatpush.bf16.msrb.mxu0 %v2643_v41  ;;  %1177 = vmatpush.bf16.msrb.mxu1 %v2771_v42  ;;  %v3240_v41 = vld [vmem:[#allocation5 + $0xf0] sm:$0xf0]  ;;  %v3255_v42 = vor.u32 %v3926_v14, %v3254_v40  ;;  %v3928_v40 = vld [vmem:[#allocation5 + $0x124] sm:$0xf] }
  0xe4   :  { %1190 = vmatpush.bf16.msrb.mxu2 %v2899_v46  ;;  %1203 = vmatpush.bf16.msrb.mxu3 %v3027_v47  ;;  %v3243_v43 = vor.u32 %v3920_v18, %v3240_v41  ;;  %v3916_v46 = vld [vmem:[#allocation5 + $0xc4] sm:$0xf]  ;;  %v3371_v47 = vor.u32 %v3952_v44, %v3368_v45  ;;  %v3446_v18 = vld [vmem:[#allocation5 + $0x280] sm:$0xf]  ;;  %v3974_v41 = vld [vmem:[#allocation5 + $0x28c] sm:$0xf0] }
  0xe5   :  { %v3227_v51 = vor.u32 %v3916_v46, %v3224_v48  ;;  %v4006_v44 = vld [vmem:[#allocation5 + $0x38c] sm:$0xf0]  ;;  %v3892_v45 = vld [vmem:[#allocation5 + $0x4] sm:$0xf]  ;;  %v3128_v46 = vld [vmem:[#allocation5 + $0x10] sm:$0xf0] }
  0xe6   :  { %v3131_v48 = vor.u32 %v3892_v45, %v3128_v46 }
  0xe7   :  { %1165 = vmatpush.bf16.msrb.mxu0 %v2627_v61  ;;  %1178 = vmatpush.bf16.msrb.mxu1 %v2755_v62  ;;  %v3336_v61 = vld [vmem:[#allocation5 + $0x1b0] sm:$0xf0]  ;;  %v3908_v62 = vld [vmem:[#allocation5 + $0x84] sm:$0xf] }
  0xe8   :  { %1191 = vmatpush.bf16.msrb.mxu2 %v2883_v63  ;;  %1204 = vmatpush.bf16.msrb.mxu3 %v3011_v0  ;;  %v3192_v63 = vld [vmem:[#allocation5 + $0x90] sm:$0xf0]  ;;  %v3339_v0 = vor.u32 %v3944_v59, %v3336_v61  ;;  %v3970_v61 = vld [vmem:[#allocation5 + $0x26c] sm:$0xf0] }
  0xe9   :  { %v3195_v3 = vor.u32 %v3908_v62, %v3192_v63  ;;  %v3558_v62 = vld [vmem:[#allocation5 + $0x360] sm:$0xf] }
  0xea   :  { %1166 = vmatmul.bf16.vlgmr.msrb.gmra.mxu0 %v4309_v55  ;;  %1179 = vmatmul.bf16.vlgmr.msrb.gmra.mxu1 %v4311_v56  ;;  %v3191_v55 = vor.u32 %v3910_v20, %v3190_v19  ;;  %v3174_v56 = vld [vmem:[#allocation5 + $0x60] sm:$0xf]  ;;  %v3936_v19 = vld [vmem:[#allocation5 + $0x164] sm:$0xf]  ;;  %v3304_v20 = vld [vmem:[#allocation5 + $0x170] sm:$0xf0] }
  0xeb   :  { %2025 = vmatpush.bf16.msra.mxu0 %v3239_v1  ;;  %2038 = vmatpush.bf16.msra.mxu1 %v3367_v2  ;;  %v3940_v1 = vld [vmem:[#allocation5 + $0x184] sm:$0xf]  ;;  %v3320_v2 = vld [vmem:[#allocation5 + $0x190] sm:$0xf0]  ;;  %v3307_v21 = vor.u32 %v3936_v19, %v3304_v20  ;;  %v3526_v19 = vld [vmem:[#allocation5 + $0x320] sm:$0xf] }
  0xec   :  { %1192 = vmatmul.bf16.vlgmr.msrb.gmra.mxu2 %v4313_v57  ;;  %1205 = vmatmul.bf16.vlgmr.msrb.gmra.mxu3 %v4315_v58  ;;  %v3175_v57 = vor.u32 %v3906_v24, %v3174_v56  ;;  %v3303_v58 = vor.u32 %v3938_v30, %v3302_v29  ;;  %v3323_v5 = vor.u32 %v3940_v1, %v3320_v2  ;;  %v4014_v56 = vld [vmem:[#allocation5 + $0x3cc] sm:$0xf0]  ;;  %v3900_v30 = vld [vmem:[#allocation5 + $0x44] sm:$0xf]  ;;  %v3414_v2 = vld [vmem:[#allocation5 + $0x240] sm:$0xf] }
  0xed   :  { %v1216_v20 = vld [vmem:[#allocation1 + $0x9] sm:$0xff] }
  0xef   :  { %2026 = vmatpush.bf16.msra.mxu0 %v3223_v7  ;;  %2039 = vmatpush.bf16.msra.mxu1 %v3351_v8  ;;  %v3986_v7 = vld [vmem:[#allocation5 + $0x2ec] sm:$0xf0]  ;;  %v3622_v8 = vld [vmem:[#allocation5 + $0x3e0] sm:$0xf] }
  0xf0   :  { %v3495_v9 = vor.u32 %v3986_v7, %v3494_v6  ;;  %v3998_v6 = vld [vmem:[#allocation5 + $0x34c] sm:$0xf0] }
  0xf1   :  { %v3543_v7 = vor.u32 %v3998_v6, %v3542_v4  ;;  %v3955_v4 = vld [vmem:[#allocation5 + $0x1f4] sm:$0xf0] }
  0xf2   :  { %2051 = vmatpush.bf16.msra.mxu2 %v3495_v9 }
  0xf3   :  { %2027 = vmatpush.bf16.msra.mxu0 %v3207_v16  ;;  %2040 = vmatpush.bf16.msra.mxu1 %v3335_v17  ;;  %v3623_v16 = vor.u32 %v4018_v10, %v3622_v8  ;;  %v3179_v17 = vor.u32 %v3904_v11, %v3176_v15  ;;  %v1215_v10 = vld [vmem:[#allocation1] sm:$0xff] }
  0xf5   :  { %2064 = vmatpush.bf16.msra.mxu3 %v3623_v16  ;;  %v3398_v16 = vld [vmem:[#allocation5 + $0x220] sm:$0xf] }
  0xf7   :  { %2028 = vmatpush.bf16.msra.mxu0 %v3191_v55  ;;  %2041 = vmatpush.bf16.msra.mxu1 %v3319_v23  ;;  %v3982_v55 = vld [vmem:[#allocation5 + $0x2cc] sm:$0xf0]  ;;  %v3606_v23 = vld [vmem:[#allocation5 + $0x3c0] sm:$0xf] }
  0xf8   :  { %v3479_v24 = vor.u32 %v3982_v55, %v3478_v22  ;;  %v3607_v29 = vor.u32 %v4014_v56, %v3606_v23  ;;  %v3994_v22 = vld [vmem:[#allocation5 + $0x32c] sm:$0xf0]  ;;  %v1219_v23 = vpack.i.b16 %v1215_v10, %v1215_v10  ;;  %v3382_v56 = vld [vmem:[#allocation5 + $0x200] sm:$0xf] }
  0xf9   :  { %v3527_v55 = vor.u32 %v3994_v22, %v3526_v19 }
  0xfa   :  { %2052 = vmatpush.bf16.msra.mxu2 %v3479_v24  ;;  %2065 = vmatpush.bf16.msra.mxu3 %v3607_v29  ;;  %v3958_v24 = vld [vmem:[#allocation5 + $0x20c] sm:$0xf0]  ;;  %v3510_v29 = vld [vmem:[#allocation5 + $0x300] sm:$0xf] }
  0xfb   :  { %2029 = vmatpush.bf16.msra.mxu0 %v3175_v57  ;;  %2042 = vmatpush.bf16.msra.mxu1 %v3303_v58  ;;  %v3160_v57 = vld [vmem:[#allocation5 + $0x50] sm:$0xf0]  ;;  %v3932_v58 = vld [vmem:[#allocation5 + $0x144] sm:$0xf] }
  0xfc   :  { %v3163_v31 = vor.u32 %v3900_v30, %v3160_v57  ;;  %v1222_v57 = vpack.i.b16 %v1216_v20, %v1216_v20 }
  0xff   :  { %2030 = vmatpush.bf16.msra.mxu0 %v3159_v27  ;;  %2043 = vmatpush.bf16.msra.mxu1 %v3287_v12  ;;  %v3291_v27 = vor.u32 %v3932_v58, %v3288_v25  ;;  %v3462_v12 = vld [vmem:[#allocation5 + $0x2a0] sm:$0xf]  ;;  %v3383_v58 = vor.u32 %v3958_v24, %v3382_v56  ;;  %v3984_v25 = vld [vmem:[#allocation5 + $0x2e4] sm:$0xf]  ;;  %v3919_v24 = vld [vmem:[#allocation5 + $0xd4] sm:$0xf0] }
 0x100   :  { %v3463_v35 = vor.u32 %v3978_v33, %v3462_v12 }
 0x102   :  { %2053 = vmatpush.bf16.msra.mxu2 %v3463_v35  ;;  %v3624_v35 = vld [vmem:[#allocation5 + $0x3f0] sm:$0xf0] }
 0x103   :  { %2031 = vmatpush.bf16.msra.mxu0 %v3143_v36  ;;  %2044 = vmatpush.bf16.msra.mxu1 %v3271_v28  ;;  %v4010_v36 = vld [vmem:[#allocation5 + $0x3ac] sm:$0xf0]  ;;  %v3144_v28 = vld [vmem:[#allocation5 + $0x30] sm:$0xf0] }
 0x104   :  { %v3591_v38 = vor.u32 %v4010_v36, %v3590_v34  ;;  %v3147_v39 = vor.u32 %v3896_v37, %v3144_v28  ;;  %v4016_v34 = vld [vmem:[#allocation5 + $0x3e4] sm:$0xf] }
 0x105   :  { %v3627_v28 = vor.u32 %v4016_v34, %v3624_v35  ;;  %v3214_v34 = vld [vmem:[#allocation5 + $0xa8] sm:$0xf] }
 0x106   :  { %2066 = vmatpush.bf16.msra.mxu3 %v3591_v38 }
 0x107   :  { %2032 = vmatpush.bf16.msra.mxu0 %v3127_v13  ;;  %2045 = vmatpush.bf16.msra.mxu1 %v3255_v42  ;;  %v3272_v13 = vld [vmem:[#allocation5 + $0x130] sm:$0xf0]  ;;  %v3574_v42 = vld [vmem:[#allocation5 + $0x380] sm:$0xf] }
 0x108   :  { %v3275_v14 = vor.u32 %v3928_v40, %v3272_v13  ;;  %v3980_v40 = vld [vmem:[#allocation5 + $0x2c4] sm:$0xf]  ;;  %v3480_v13 = vld [vmem:[#allocation5 + $0x2d0] sm:$0xf0] }
 0x10b   :  { %2077 = vmatpush.bf16.msrb.mxu0 %v3243_v43  ;;  %2090 = vmatpush.bf16.msrb.mxu1 %v3371_v47  ;;  %v3447_v43 = vor.u32 %v3974_v41, %v3446_v18  ;;  %v3575_v47 = vor.u32 %v4006_v44, %v3574_v42  ;;  %v4012_v42 = vld [vmem:[#allocation5 + $0x3c4] sm:$0xf]  ;;  %v3483_v44 = vor.u32 %v3980_v40, %v3480_v13  ;;  %v3416_v13 = vld [vmem:[#allocation5 + $0x250] sm:$0xf0] }
 0x10c   :  { %v3964_v40 = vld [vmem:[#allocation5 + $0x244] sm:$0xf] }
 0x10d   :  { %2054 = vmatpush.bf16.msra.mxu2 %v3447_v43  ;;  %2067 = vmatpush.bf16.msra.mxu3 %v3575_v47  ;;  %v3608_v43 = vld [vmem:[#allocation5 + $0x3d0] sm:$0xf0] }
 0x10e   :  { %v3611_v45 = vor.u32 %v4012_v42, %v3608_v43 }
 0x10f   :  { %2078 = vmatpush.bf16.msrb.mxu0 %v3227_v51  ;;  %2091 = vmatpush.bf16.msrb.mxu1 %v3355_v52  ;;  %v3259_v51 = vor.u32 %v3924_v49, %v3256_v50 }
 0x113   :  { %2079 = vmatpush.bf16.msrb.mxu0 %v3211_v60  ;;  %2092 = vmatpush.bf16.msrb.mxu1 %v3339_v0  ;;  %v3430_v60 = vld [vmem:[#allocation5 + $0x260] sm:$0xf]  ;;  %v4002_v0 = vld [vmem:[#allocation5 + $0x36c] sm:$0xf0] }
 0x114   :  { %v3431_v63 = vor.u32 %v3970_v61, %v3430_v60  ;;  %v3559_v1 = vor.u32 %v4002_v0, %v3558_v62  ;;  %v3246_v61 = vld [vmem:[#allocation5 + $0xe8] sm:$0xf] }
 0x116   :  { %2055 = vmatpush.bf16.msra.mxu2 %v3431_v63  ;;  %2068 = vmatpush.bf16.msra.mxu3 %v3559_v1  ;;  %v3592_v63 = vld [vmem:[#allocation5 + $0x3b0] sm:$0xf0] }
 0x117   :  { %2080 = vmatpush.bf16.msrb.mxu0 %v3195_v3  ;;  %2093 = vmatpush.bf16.msrb.mxu1 %v3323_v5  ;;  %v3966_v3 = vld [vmem:[#allocation5 + $0x24c] sm:$0xf0] }
 0x118   :  { %v3415_v5 = vor.u32 %v3966_v3, %v3414_v2  ;;  %v3923_v2 = vld [vmem:[#allocation5 + $0xf4] sm:$0xf0]  ;;  %v3374_v3 = vld [vmem:[#allocation5 + $0x1e8] sm:$0xf] }
 0x119   :  { %v3375_v22 = vor.u32 %v3955_v4, %v3374_v3  ;;  %v3956_v4 = vld [vmem:[#allocation5 + $0x204] sm:$0xf] }
 0x11a   :  { %2056 = vmatpush.bf16.msra.mxu2 %v3415_v5  ;;  %2069 = vmatpush.bf16.msra.mxu3 %v3543_v7  ;;  %v3972_v7 = vld [vmem:[#allocation5 + $0x284] sm:$0xf] }
 0x11b   :  { %2081 = vmatpush.bf16.msrb.mxu0 %v3179_v17  ;;  %2094 = vmatpush.bf16.msrb.mxu1 %v3307_v21  ;;  %v3962_v17 = vld [vmem:[#allocation5 + $0x22c] sm:$0xf0] }
 0x11c   :  { %v3399_v21 = vor.u32 %v3962_v17, %v3398_v16 }
 0x11e   :  { %2057 = vmatpush.bf16.msra.mxu2 %v3399_v21  ;;  %2070 = vmatpush.bf16.msra.mxu3 %v3527_v55  ;;  %v3247_v21 = vor.u32 %v3923_v2, %v3246_v61  ;;  %v3230_v55 = vld [vmem:[#allocation5 + $0xc8] sm:$0xf] }
 0x11f   :  { %2082 = vmatpush.bf16.msrb.mxu0 %v3163_v31  ;;  %2095 = vmatpush.bf16.msrb.mxu1 %v3291_v27  ;;  %v3990_v31 = vld [vmem:[#allocation5 + $0x30c] sm:$0xf0]  ;;  %v3496_v27 = vld [vmem:[#allocation5 + $0x2f0] sm:$0xf0]  ;;  %v3182_v61 = vld [vmem:[#allocation5 + $0x68] sm:$0xf] }
 0x120   :  { %v3511_v12 = vor.u32 %v3990_v31, %v3510_v29  ;;  %v3499_v33 = vor.u32 %v3984_v25, %v3496_v27  ;;  %v3358_v29 = vld [vmem:[#allocation5 + $0x1c8] sm:$0xf]  ;;  %v4000_v31 = vld [vmem:[#allocation5 + $0x364] sm:$0xf]  ;;  %v3560_v27 = vld [vmem:[#allocation5 + $0x370] sm:$0xf0] }
 0x121   :  { %v3563_v35 = vor.u32 %v4000_v31, %v3560_v27  ;;  %v3134_v31 = vld [vmem:[#allocation5 + $0x8] sm:$0xf] }
 0x122   :  { %2058 = vmatpush.bf16.msra.mxu2 %v3383_v58  ;;  %2071 = vmatpush.bf16.msra.mxu3 %v3511_v12  ;;  %v3432_v58 = vld [vmem:[#allocation5 + $0x270] sm:$0xf0]  ;;  %v3231_v12 = vor.u32 %v3919_v24, %v3230_v55  ;;  %v3150_v55 = vld [vmem:[#allocation5 + $0x28] sm:$0xf]  ;;  %v3899_v24 = vld [vmem:[#allocation5 + $0x34] sm:$0xf0] }
 0x123   :  { %2083 = vmatpush.bf16.msrb.mxu0 %v3147_v39  ;;  %2096 = vmatpush.bf16.msrb.mxu1 %v3275_v14  ;;  %v3262_v27 = vld [vmem:[#allocation5 + $0x108] sm:$0xf] }
 0x126   :  { %v4336_v26 = vpop.f32.mrf.mxu0  ;;  %v4338_v32 = vpop.f32.mrf.mxu1  ;;  %2103 = vmatpush.bf16.msrb.mxu2 %v3499_v33  ;;  %2116 = vmatpush.bf16.msrb.mxu3 %v3627_v28  ;;  %v3947_v28 = vld [vmem:[#allocation5 + $0x1b4] sm:$0xf0] }
 0x127   :  { %2084 = vmatpush.bf16.msrb.mxu0 %v3131_v48  ;;  %2097 = vmatpush.bf16.msrb.mxu1 %v3259_v51  ;;  %v1025_v30 = vadd.f32 %v4338_v32, %v4336_v26  ;;  %v1221_v26 = vperm.slane %v1219_v23, 0  ;;  %v1224_v32 = vperm.slane %v1222_v57, 0  ;;  %v3976_v51 = vld [vmem:[#allocation5 + $0x2a4] sm:$0xf] }
 0x128   :  { %v3968_v57 = vld [vmem:[#allocation5 + $0x264] sm:$0xf] }
 0x129   :  { %v1235_v49 = vunpack.c.l.bf16 %v1221_v26  ;;  %v1236_v50 = vunpack.c.l.bf16 %v1224_v32  ;;  %v3435_v25 = vor.u32 %v3968_v57, %v3432_v58  ;;  %v3151_v57 = vor.u32 %v3899_v24, %v3150_v55  ;;  %v3937_v55 = vld [vmem:[#allocation5 + $0x16c] sm:$0xf]  ;;  %v3312_v24 = vld [vmem:[#allocation5 + $0x178] sm:$0xf0] }
 0x12a   :  { %2104 = vmatpush.bf16.msrb.mxu2 %v3483_v44  ;;  %2117 = vmatpush.bf16.msrb.mxu3 %v3611_v45  ;;  %v3198_v44 = vld [vmem:[#allocation5 + $0x88] sm:$0xf] }
 0x12d   :  { %v1037_v52 = vpop.f32.mrf.mxu2  ;;  %v4340_v53 = vpop.f32.mrf.mxu3 }
 0x12e   :  { %v1013_v54 = vpop.f32.mrf.mxu0  ;;  %v1026_v59 = vpop.f32.mrf.mxu1  ;;  %v1038_v36 = vadd.f32 %v1037_v52, %v1025_v30  ;;  %v3464_v52 = vld [vmem:[#allocation5 + $0x2b0] sm:$0xf0]  ;;  %v3951_v30 = vld [vmem:[#allocation5 + $0x1d4] sm:$0xf0] }
 0x12f   :  { %v4008_v54 = vld [vmem:[#allocation5 + $0x3a4] sm:$0xf]  ;;  %v3467_v62 = vor.u32 %v3976_v51, %v3464_v52  ;;  %v3359_v33 = vor.u32 %v3951_v30, %v3358_v29  ;;  %v3278_v29 = vld [vmem:[#allocation5 + $0x128] sm:$0xf]  ;;  %v3931_v30 = vld [vmem:[#allocation5 + $0x134] sm:$0xf0] }
 0x130   :  { %v1051_v46 = vadd.f32 %v4340_v53, %v1038_v36  ;;  %v3595_v53 = vor.u32 %v4008_v54, %v3592_v63  ;;  %v3915_v36 = vld [vmem:[#allocation5 + $0xb4] sm:$0xf0]  ;;  %v3992_v51 = vld [vmem:[#allocation5 + $0x324] sm:$0xf]  ;;  %v3528_v54 = vld [vmem:[#allocation5 + $0x330] sm:$0xf0]  ;;  %v3279_v58 = vor.u32 %v3931_v30, %v3278_v29 }
 0x131   :  { %2105 = vmatpush.bf16.msrb.mxu2 %v3467_v62  ;;  %v3215_v42 = vor.u32 %v3915_v36, %v3214_v34  ;;  %v3531_v62 = vor.u32 %v3992_v51, %v3528_v54  ;;  %v3907_v63 = vld [vmem:[#allocation5 + $0x74] sm:$0xf0]  ;;  %v3248_v34 = vld [vmem:[#allocation5 + $0xf8] sm:$0xf0] }
 0x132   :  { %2118 = vmatpush.bf16.msrb.mxu3 %v3595_v53  ;;  %v3384_v53 = vld [vmem:[#allocation5 + $0x210] sm:$0xf0]  ;;  %v3376_v36 = vld [vmem:[#allocation5 + $0x1f8] sm:$0xf0] }
 0x133   :  { %v3216_v54 = vld [vmem:[#allocation5 + $0xb8] sm:$0xf0] }
 0x135   :  { %v1039_v8 = vpop.f32.mrf.mxu2  ;;  %v1052_v9 = vpop.f32.mrf.mxu3 }
 0x136   :  { %v1063_v11 = vpop.f32.mrf.mxu0  ;;  %v1076_v15 = vpop.f32.mrf.mxu1  ;;  %v3448_v8 = vld [vmem:[#allocation5 + $0x290] sm:$0xf0]  ;;  %v4004_v9 = vld [vmem:[#allocation5 + $0x384] sm:$0xf] }
 0x137   :  { %v1077_v37 = vadd.f32 %v1076_v15, %v1063_v11  ;;  %v3451_v10 = vor.u32 %v3972_v7, %v3448_v8  ;;  %v3576_v11 = vld [vmem:[#allocation5 + $0x390] sm:$0xf0]  ;;  %v3183_v8 = vor.u32 %v3907_v63, %v3182_v61 }
 0x138   :  { %v3579_v20 = vor.u32 %v4004_v9, %v3576_v11  ;;  %v3512_v7 = vld [vmem:[#allocation5 + $0x310] sm:$0xf0] }
 0x139   :  { %2106 = vmatpush.bf16.msrb.mxu2 %v3451_v10  ;;  %v3166_v10 = vld [vmem:[#allocation5 + $0x48] sm:$0xf] }
 0x13a   :  { %2119 = vmatpush.bf16.msrb.mxu3 %v3579_v20  ;;  %v3935_v20 = vld [vmem:[#allocation5 + $0x154] sm:$0xf0] }
 0x13d   :  { %v1089_v38 = vpop.f32.mrf.mxu2  ;;  %v1102_v39 = vpop.f32.mrf.mxu3  ;;  %2107 = vmatpush.bf16.msrb.mxu2 %v3435_v25  ;;  %v3895_v25 = vld [vmem:[#allocation5 + $0x14] sm:$0xf0] }
 0x13e   :  { %v1090_v14 = vadd.f32 %v1089_v38, %v1077_v37  ;;  %v1065_v18 = vpop.f32.mrf.mxu0  ;;  %v1078_v41 = vpop.f32.mrf.mxu1  ;;  %v3342_v37 = vld [vmem:[#allocation5 + $0x1a8] sm:$0xf]  ;;  %2120 = vmatpush.bf16.msrb.mxu3 %v3563_v35  ;;  %v3953_v35 = vld [vmem:[#allocation5 + $0x1ec] sm:$0xf] }
 0x13f   :  { %v3419_v18 = vor.u32 %v3964_v40, %v3416_v13  ;;  %v3544_v41 = vld [vmem:[#allocation5 + $0x350] sm:$0xf0]  ;;  %v3343_v43 = vor.u32 %v3947_v28, %v3342_v37  ;;  %v3135_v40 = vor.u32 %v3895_v25, %v3134_v31  ;;  %v3987_v31 = vld [vmem:[#allocation5 + $0x2f4] sm:$0xf0]  ;;  %v3630_v25 = vld [vmem:[#allocation5 + $0x3e8] sm:$0xf] }
 0x140   :  { %v1103_v47 = vadd.f32 %v1102_v39, %v1090_v14  ;;  %v3996_v14 = vld [vmem:[#allocation5 + $0x344] sm:$0xf] }
 0x141   :  { %v3547_v45 = vor.u32 %v3996_v14, %v3544_v41  ;;  %2108 = vmatpush.bf16.msrb.mxu2 %v3419_v18  ;;  %v1217_v14 = vld [vmem:[#allocation1 + $0x12] sm:$0xff]  ;;  %v3379_v18 = vor.u32 %v3953_v35, %v3376_v36  ;;  %v3168_v35 = vld [vmem:[#allocation5 + $0x58] sm:$0xf0] }
 0x142   :  { %v1210_v48 = vpack.c.bf16 %v1103_v47, %v1051_v46  ;;  %v3911_v46 = vld [vmem:[#allocation5 + $0x94] sm:$0xf0]  ;;  %v3326_v47 = vld [vmem:[#allocation5 + $0x188] sm:$0xf]  ;;  %v3917_v41 = vld [vmem:[#allocation5 + $0xcc] sm:$0xf] }
 0x143   :  { %2121 = vmatpush.bf16.msrb.mxu3 %v3547_v45 }
 0x144   :  { %v1231_v59 = vunpack.c.l.bf16 %v1210_v48  ;;  %v1232_v60 = vunpack.c.h.bf16 %v1210_v48  ;;  %v3943_v48 = vld [vmem:[#allocation5 + $0x194] sm:$0xf0] }
 0x145   :  { %v1091_v0 = vpop.f32.mrf.mxu2  ;;  %v1104_v1 = vpop.f32.mrf.mxu3 }
 0x146   :  { %v1239_v5 = vadd.f32 %v1235_v49, %v1231_v59  ;;  %v1240_v6 = vadd.f32 %v1236_v50, %v1232_v60  ;;  %v3960_v49 = vld [vmem:[#allocation5 + $0x224] sm:$0xf]  ;;  %v3400_v50 = vld [vmem:[#allocation5 + $0x230] sm:$0xf0]  ;;  %v3199_v59 = vor.u32 %v3911_v46, %v3198_v44  ;;  %v3327_v60 = vor.u32 %v3943_v48, %v3326_v47  ;;  %v3310_v0 = vld [vmem:[#allocation5 + $0x168] sm:$0xf] }
 0x147   :  { %v4345_v17 = vpop.f32.mrf.mxu0  ;;  %v4347_v19 = vpop.f32.mrf.mxu1  ;;  %v3403_v52 = vor.u32 %v3960_v49, %v3400_v50  ;;  %v3939_v1 = vld [vmem:[#allocation5 + $0x174] sm:$0xf0]  ;;  %2122 = vmatpush.bf16.msrb.mxu3 %v3531_v62  ;;  %v3360_v44 = vld [vmem:[#allocation5 + $0x1d8] sm:$0xf0]  ;;  %v1225_v46 = vpack.i.b16 %v1217_v14, %v1217_v14  ;;  %v3913_v50 = vld [vmem:[#allocation5 + $0xac] sm:$0xf] }
 0x148   :  { %v1249_v15 = vmax.f32 %v1239_v5, 0.0  ;;  %v1250_v16 = vmax.f32 %v1240_v6, 0.0  ;;  %v3988_v5 = vld [vmem:[#allocation5 + $0x304] sm:$0xf]  ;;  %v3387_v6 = vor.u32 %v3956_v4, %v3384_v53  ;;  %v3311_v9 = vor.u32 %v3939_v1, %v3310_v0 }
 0x149   :  { %2109 = vmatpush.bf16.msrb.mxu2 %v3403_v52  ;;  %v3515_v11 = vor.u32 %v3988_v5, %v3512_v7  ;;  %v1129_v45 = vadd.f32 %v4347_v19, %v4345_v17  ;;  %v1227_v19 = vperm.slane %v1225_v46, 0  ;;  %v3200_v5 = vld [vmem:[#allocation5 + $0x98] sm:$0xf0]  ;;  %v3897_v46 = vld [vmem:[#allocation5 + $0x2c] sm:$0xf] }
 0x14a   :  { %v4349_v23 = vpack.c.bf16 %v1249_v15, %v1249_v15  ;;  %v4351_v56 = vpack.c.bf16 %v1250_v16, %v1250_v16  ;;  %v3903_v15 = vld [vmem:[#allocation5 + $0x54] sm:$0xf0]  ;;  %v3294_v16 = vld [vmem:[#allocation5 + $0x148] sm:$0xf]  ;;  %v3328_v7 = vld [vmem:[#allocation5 + $0x198] sm:$0xf0] }
 0x14b   :  { %2123 = vmatpush.bf16.msrb.mxu3 %v3515_v11 }
 0x14c   :  { %2033 = vmatmul.bf16.vlgmr.msra.gmra.mxu0 %v4349_v23  ;;  %2046 = vmatmul.bf16.vlgmr.msra.gmra.mxu1 %v4351_v56 }
 0x14d   :  { %2129 = vmatpush.bf16.msra.mxu0 %v3247_v21  ;;  %2142 = vmatpush.bf16.msra.mxu1 %v3375_v22  ;;  %v3167_v21 = vor.u32 %v3903_v15, %v3166_v10  ;;  %v3295_v22 = vor.u32 %v3935_v20, %v3294_v16  ;;  %v3905_v16 = vld [vmem:[#allocation5 + $0x6c] sm:$0xf] }
 0x14e   :  { %2110 = vmatpush.bf16.msrb.mxu2 %v3387_v6  ;;  %v3941_v6 = vld [vmem:[#allocation5 + $0x18c] sm:$0xf] }
 0x14f   :  { %v1117_v26 = vpop.f32.mrf.mxu0  ;;  %v1130_v32 = vpop.f32.mrf.mxu1  ;;  %v3331_v15 = vor.u32 %v3941_v6, %v3328_v7 }
 0x150   :  { %v4355_v38 = vpop.f32.mrf.mxu2  ;;  %v4357_v39 = vpop.f32.mrf.mxu3  ;;  %v1218_v26 = vld [vmem:[#allocation1 + $0x1b] sm:$0xff] }
 0x151   :  { %2130 = vmatpush.bf16.msra.mxu0 %v3231_v12  ;;  %2143 = vmatpush.bf16.msra.mxu1 %v3359_v33  ;;  %v3927_v12 = vld [vmem:[#allocation5 + $0x114] sm:$0xf0]  ;;  %v3921_v33 = vld [vmem:[#allocation5 + $0xec] sm:$0xf]  ;;  %v1228_v47 = vpack.i.b16 %v1218_v26, %v1218_v26  ;;  %v1142_v51 = vadd.f32 %v4355_v38, %v1129_v45  ;;  %v3486_v26 = vld [vmem:[#allocation5 + $0x2c8] sm:$0xf] }
 0x152   :  { %v3263_v13 = vor.u32 %v3927_v12, %v3262_v27  ;;  %v3251_v32 = vor.u32 %v3921_v33, %v3248_v34  ;;  %v3909_v38 = vld [vmem:[#allocation5 + $0x8c] sm:$0xf]  ;;  %v4019_v27 = vld [vmem:[#allocation5 + $0x3f4] sm:$0xf0]  ;;  %v3315_v33 = vor.u32 %v3937_v55, %v3312_v24  ;;  %v3550_v55 = vld [vmem:[#allocation5 + $0x348] sm:$0xf] }
 0x153   :  { %v1230_v63 = vperm.slane %v1228_v47, 0  ;;  %v1155_v4 = vadd.f32 %v4357_v39, %v1142_v51  ;;  %v3203_v11 = vor.u32 %v3909_v38, %v3200_v5  ;;  %v3502_v39 = vld [vmem:[#allocation5 + $0x2e8] sm:$0xf]  ;;  %v3901_v34 = vld [vmem:[#allocation5 + $0x4c] sm:$0xf]  ;;  %v3631_v14 = vor.u32 %v4019_v27, %v3630_v25 }
 0x154   :  { %v3152_v47 = vld [vmem:[#allocation5 + $0x38] sm:$0xf0]  ;;  %v3975_v38 = vld [vmem:[#allocation5 + $0x294] sm:$0xf0] }
 0x155   :  { %2131 = vmatpush.bf16.msra.mxu0 %v3215_v42  ;;  %2144 = vmatpush.bf16.msra.mxu1 %v3343_v43  ;;  %v3232_v42 = vld [vmem:[#allocation5 + $0xd8] sm:$0xf0]  ;;  %v3949_v43 = vld [vmem:[#allocation5 + $0x1cc] sm:$0xf]  ;;  %v1238_v10 = vunpack.c.l.bf16 %v1230_v63  ;;  %v3999_v24 = vld [vmem:[#allocation5 + $0x354] sm:$0xf0] }
 0x156   :  { %v3235_v48 = vor.u32 %v3917_v41, %v3232_v42  ;;  %v3363_v49 = vor.u32 %v3949_v43, %v3360_v44  ;;  %v3983_v41 = vld [vmem:[#allocation5 + $0x2d4] sm:$0xf0]  ;;  %v3614_v42 = vld [vmem:[#allocation5 + $0x3c8] sm:$0xf]  ;;  %v3171_v44 = vor.u32 %v3901_v34, %v3168_v35  ;;  %v3925_v63 = vld [vmem:[#allocation5 + $0x10c] sm:$0xf] }
 0x157   :  { %v4015_v43 = vld [vmem:[#allocation5 + $0x3d4] sm:$0xf0]  ;;  %v3985_v34 = vld [vmem:[#allocation5 + $0x2ec] sm:$0xf]  ;;  %v3504_v35 = vld [vmem:[#allocation5 + $0x2f8] sm:$0xf0] }
 0x158   :  { %v1143_v2 = vpop.f32.mrf.mxu2  ;;  %v1156_v3 = vpop.f32.mrf.mxu3  ;;  %v3615_v51 = vor.u32 %v4015_v43, %v3614_v42  ;;  %v3959_v27 = vld [vmem:[#allocation5 + $0x214] sm:$0xf0]  ;;  %v4013_v42 = vld [vmem:[#allocation5 + $0x3cc] sm:$0xf]  ;;  %v3616_v43 = vld [vmem:[#allocation5 + $0x3d8] sm:$0xf0] }
 0x159   :  { %2132 = vmatpush.bf16.msra.mxu0 %v3199_v59  ;;  %2145 = vmatpush.bf16.msra.mxu1 %v3327_v60  ;;  %v3945_v59 = vld [vmem:[#allocation5 + $0x1ac] sm:$0xf]  ;;  %v3344_v60 = vld [vmem:[#allocation5 + $0x1b8] sm:$0xf0]  ;;  %v3219_v2 = vor.u32 %v3913_v50, %v3216_v54  ;;  %v3487_v50 = vor.u32 %v3983_v41, %v3486_v26  ;;  %v3979_v54 = vld [vmem:[#allocation5 + $0x2b4] sm:$0xf0] }
 0x15a   :  { %v3347_v3 = vor.u32 %v3945_v59, %v3344_v60  ;;  %v3598_v59 = vld [vmem:[#allocation5 + $0x3a8] sm:$0xf]  ;;  %v4011_v60 = vld [vmem:[#allocation5 + $0x3b4] sm:$0xf0]  ;;  %v3981_v26 = vld [vmem:[#allocation5 + $0x2cc] sm:$0xf] }
 0x15b   :  { %v3488_v41 = vld [vmem:[#allocation5 + $0x2d8] sm:$0xf0] }
 0x15c   :  { %2085 = vmatmul.bf16.vlgmr.msrb.gmra.mxu0 %v4349_v23  ;;  %2098 = vmatmul.bf16.vlgmr.msrb.gmra.mxu1 %v4351_v56 }
 0x15d   :  { %2133 = vmatpush.bf16.msra.mxu0 %v3183_v8  ;;  %2146 = vmatpush.bf16.msra.mxu1 %v3311_v9  ;;  %v1237_v9 = vunpack.c.l.bf16 %v1227_v19  ;;  %v3136_v19 = vld [vmem:[#allocation5 + $0x18] sm:$0xf0] }
 0x161   :  { %2134 = vmatpush.bf16.msra.mxu0 %v3167_v21  ;;  %2147 = vmatpush.bf16.msra.mxu1 %v3295_v22  ;;  %v3184_v22 = vld [vmem:[#allocation5 + $0x78] sm:$0xf0] }
 0x162   :  { %v3187_v12 = vor.u32 %v3905_v16, %v3184_v22  ;;  %v3967_v22 = vld [vmem:[#allocation5 + $0x254] sm:$0xf0] }
 0x165   :  { %2135 = vmatpush.bf16.msra.mxu0 %v3151_v57  ;;  %2148 = vmatpush.bf16.msra.mxu1 %v3279_v58 }
 0x167   :  { %v1167_v37 = vpop.f32.mrf.mxu0  ;;  %v1180_v28 = vpop.f32.mrf.mxu1 }
 0x168   :  { %v1181_v52 = vadd.f32 %v1180_v28, %v1167_v37  ;;  %v3933_v28 = vld [vmem:[#allocation5 + $0x14c] sm:$0xf] }
 0x169   :  { %2136 = vmatpush.bf16.msra.mxu0 %v3135_v40  ;;  %2149 = vmatpush.bf16.msra.mxu1 %v3263_v13  ;;  %v3296_v40 = vld [vmem:[#allocation5 + $0x158] sm:$0xf0]  ;;  %v3503_v13 = vor.u32 %v3987_v31, %v3502_v39  ;;  %v3406_v39 = vld [vmem:[#allocation5 + $0x228] sm:$0xf]  ;;  %v3995_v31 = vld [vmem:[#allocation5 + $0x334] sm:$0xf0] }
 0x16a   :  { %v3299_v45 = vor.u32 %v3933_v28, %v3296_v40 }
 0x16c   :  { %2137 = vmatmul.bf16.vlgmr.msra.gmra.mxu0 %v4349_v23  ;;  %2150 = vmatmul.bf16.vlgmr.msra.gmra.mxu1 %v4351_v56 }
 0x16d   :  { %2181 = vmatpush.bf16.msrb.mxu0 %v3251_v32  ;;  %2194 = vmatpush.bf16.msrb.mxu1 %v3379_v18 }
 0x16f   :  { %v1193_v61 = vpop.f32.mrf.mxu2  ;;  %v1206_v62 = vpop.f32.mrf.mxu3 }
 0x170   :  { %v1194_v17 = vadd.f32 %v1193_v61, %v1181_v52  ;;  %v1169_v0 = vpop.f32.mrf.mxu0  ;;  %v1182_v1 = vpop.f32.mrf.mxu1  ;;  %v3470_v52 = vld [vmem:[#allocation5 + $0x2a8] sm:$0xf]  ;;  %v3155_v61 = vor.u32 %v3897_v46, %v3152_v47  ;;  %v3977_v46 = vld [vmem:[#allocation5 + $0x2ac] sm:$0xf]  ;;  %v3472_v47 = vld [vmem:[#allocation5 + $0x2b8] sm:$0xf0] }
 0x171   :  { %2182 = vmatpush.bf16.msrb.mxu0 %v3235_v48  ;;  %2195 = vmatpush.bf16.msrb.mxu1 %v3363_v49  ;;  %v3929_v48 = vld [vmem:[#allocation5 + $0x12c] sm:$0xf]  ;;  %v3280_v49 = vld [vmem:[#allocation5 + $0x138] sm:$0xf0]  ;;  %v3471_v1 = vor.u32 %v3979_v54, %v3470_v52 }
 0x172   :  { %v1207_v53 = vadd.f32 %v1206_v62, %v1194_v17  ;;  %v3283_v62 = vor.u32 %v3929_v48, %v3280_v49  ;;  %v3893_v17 = vld [vmem:[#allocation5 + $0xc] sm:$0xf]  ;;  %v3264_v0 = vld [vmem:[#allocation5 + $0x118] sm:$0xf0] }
 0x173   :  { %v3139_v5 = vor.u32 %v3893_v17, %v3136_v19  ;;  %v3267_v6 = vor.u32 %v3925_v63, %v3264_v0  ;;  %v4009_v48 = vld [vmem:[#allocation5 + $0x3ac] sm:$0xf]  ;;  %v3600_v49 = vld [vmem:[#allocation5 + $0x3b8] sm:$0xf0] }
 0x174   :  { %v1211_v8 = vpack.c.bf16 %v1207_v53, %v1155_v4  ;;  %v3582_v4 = vld [vmem:[#allocation5 + $0x388] sm:$0xf]  ;;  %v4007_v53 = vld [vmem:[#allocation5 + $0x394] sm:$0xf0]  ;;  %v3973_v52 = vld [vmem:[#allocation5 + $0x28c] sm:$0xf] }
 0x175   :  { %2183 = vmatpush.bf16.msrb.mxu0 %v3219_v2  ;;  %2196 = vmatpush.bf16.msrb.mxu1 %v3347_v3  ;;  %v3599_v2 = vor.u32 %v4011_v60, %v3598_v59  ;;  %v3454_v3 = vld [vmem:[#allocation5 + $0x288] sm:$0xf]  ;;  %v3456_v54 = vld [vmem:[#allocation5 + $0x298] sm:$0xf0]  ;;  %v4005_v59 = vld [vmem:[#allocation5 + $0x38c] sm:$0xf] }
 0x176   :  { %v1233_v20 = vunpack.c.l.bf16 %v1211_v8  ;;  %v1234_v21 = vunpack.c.h.bf16 %v1211_v8  ;;  %v3455_v7 = vor.u32 %v3975_v38, %v3454_v3  ;;  %v3583_v8 = vor.u32 %v4007_v53, %v3582_v4  ;;  %v3584_v60 = vld [vmem:[#allocation5 + $0x398] sm:$0xf0]  ;;  %v3969_v17 = vld [vmem:[#allocation5 + $0x26c] sm:$0xf] }
 0x177   :  { %v1195_v29 = vpop.f32.mrf.mxu2  ;;  %v1208_v30 = vpop.f32.mrf.mxu3  ;;  %v3440_v19 = vld [vmem:[#allocation5 + $0x278] sm:$0xf0]  ;;  %v4001_v63 = vld [vmem:[#allocation5 + $0x36c] sm:$0xf] }
 0x178   :  { %v1241_v57 = vadd.f32 %v1237_v9, %v1233_v20  ;;  %v1242_v58 = vadd.f32 %v1238_v10, %v1234_v21  ;;  %v3438_v9 = vld [vmem:[#allocation5 + $0x268] sm:$0xf]  ;;  %v3971_v10 = vld [vmem:[#allocation5 + $0x274] sm:$0xf0]  ;;  %v3551_v30 = vor.u32 %v3999_v24, %v3550_v55  ;;  %v3568_v0 = vld [vmem:[#allocation5 + $0x378] sm:$0xf0] }
 0x179   :  { %2184 = vmatpush.bf16.msrb.mxu0 %v3203_v11  ;;  %2197 = vmatpush.bf16.msrb.mxu1 %v3331_v15  ;;  %v3566_v11 = vld [vmem:[#allocation5 + $0x368] sm:$0xf]  ;;  %v4003_v15 = vld [vmem:[#allocation5 + $0x374] sm:$0xf0]  ;;  %v3439_v16 = vor.u32 %v3971_v10, %v3438_v9  ;;  %v3965_v3 = vld [vmem:[#allocation5 + $0x24c] sm:$0xf] }
 0x17a   :  { %v1251_v36 = vmax.f32 %v1241_v57, 0.0  ;;  %v1252_v37 = vmax.f32 %v1242_v58, 0.0  ;;  %v3567_v20 = vor.u32 %v4003_v15, %v3566_v11  ;;  %v3422_v21 = vld [vmem:[#allocation5 + $0x248] sm:$0xf]  ;;  %v3963_v57 = vld [vmem:[#allocation5 + $0x234] sm:$0xf0] }
 0x17b   :  { %v3423_v29 = vor.u32 %v3967_v22, %v3422_v21  ;;  %v3534_v58 = vld [vmem:[#allocation5 + $0x328] sm:$0xf]  ;;  %v3424_v38 = vld [vmem:[#allocation5 + $0x258] sm:$0xf0]  ;;  %v3997_v4 = vld [vmem:[#allocation5 + $0x34c] sm:$0xf] }
 0x17c   :  { %v4367_v32 = vpack.c.bf16 %v1251_v36, %v1251_v36  ;;  %v4369_v18 = vpack.c.bf16 %v1252_v37, %v1252_v37  ;;  %v3535_v25 = vor.u32 %v3995_v31, %v3534_v58  ;;  %v4017_v36 = vld [vmem:[#allocation5 + $0x3ec] sm:$0xf]  ;;  %v3632_v37 = vld [vmem:[#allocation5 + $0x3f8] sm:$0xf0] }
 0x17d   :  { %2185 = vmatpush.bf16.msrb.mxu0 %v3187_v12  ;;  %2198 = vmatpush.bf16.msrb.mxu1 %v3315_v33  ;;  %v3518_v12 = vld [vmem:[#allocation5 + $0x308] sm:$0xf]  ;;  %v3991_v33 = vld [vmem:[#allocation5 + $0x314] sm:$0xf0]  ;;  %v3552_v53 = vld [vmem:[#allocation5 + $0x358] sm:$0xf0] }
 0x17e   :  { %2059 = vmatmul.bf16.vlgmr.msra.gmra.mxu2 %v4367_v32  ;;  %2072 = vmatmul.bf16.vlgmr.msra.gmra.mxu3 %v4369_v18  ;;  %v3519_v40 = vor.u32 %v3991_v33, %v3518_v12  ;;  %v3993_v9 = vld [vmem:[#allocation5 + $0x32c] sm:$0xf]  ;;  %v3536_v10 = vld [vmem:[#allocation5 + $0x338] sm:$0xf0]  ;;  %v4026_v33 = vld [vmem:[#allocation8 + $0x30] sm:$0xff] }
 0x17f   :  { %2155 = vmatpush.bf16.msra.mxu2 %v3503_v13  ;;  %2168 = vmatpush.bf16.msra.mxu3 %v3631_v14  ;;  %v3507_v13 = vor.u32 %v3985_v34, %v3504_v35  ;;  %v3635_v14 = vor.u32 %v4017_v36, %v3632_v37  ;;  %v3539_v15 = vor.u32 %v3993_v9, %v3536_v10  ;;  %v3989_v21 = vld [vmem:[#allocation5 + $0x30c] sm:$0xf]  ;;  %v3520_v22 = vld [vmem:[#allocation5 + $0x318] sm:$0xf0]  ;;  %v4034_v34 = vld [vmem:[#allocation8 + $0x70] sm:$0xff] }
 0x180   :  { %v3523_v24 = vor.u32 %v3989_v21, %v3520_v22  ;;  %v4024_v35 = vld [vmem:[#allocation8 + $0x20] sm:$0xff] }
 0x181   :  { %2186 = vmatpush.bf16.msrb.mxu0 %v3171_v44  ;;  %2199 = vmatpush.bf16.msrb.mxu1 %v3299_v45  ;;  %v3491_v44 = vor.u32 %v3981_v26, %v3488_v41  ;;  %v3619_v45 = vor.u32 %v4013_v42, %v3616_v43  ;;  %v4032_v36 = vld [vmem:[#allocation8 + $0x60] sm:$0xff]  ;;  %v4031_v26 = vld [vmem:[#allocation8 + $0x58] sm:$0xff]  ;;  %v4022_v43 = vld [vmem:[#allocation8 + $0x10] sm:$0xff] }
 0x183   :  { %2156 = vmatpush.bf16.msra.mxu2 %v3487_v50  ;;  %2169 = vmatpush.bf16.msra.mxu3 %v3615_v51  ;;  %v3475_v50 = vor.u32 %v3977_v46, %v3472_v47  ;;  %v3603_v51 = vor.u32 %v4009_v48, %v3600_v49  ;;  %v4029_v46 = vld [vmem:[#allocation8 + $0x48] sm:$0xff]  ;;  %v4020_v47 = vld [vmem:[#allocation8] sm:$0xff] }
 0x184   :  { %v4028_v48 = vld [vmem:[#allocation8 + $0x40] sm:$0xff] }
 0x185   :  { %2187 = vmatpush.bf16.msrb.mxu0 %v3155_v61  ;;  %2200 = vmatpush.bf16.msrb.mxu1 %v3283_v62  ;;  %v3459_v61 = vor.u32 %v3973_v52, %v3456_v54  ;;  %v3587_v62 = vor.u32 %v4005_v59, %v3584_v60  ;;  %v4043_v54 = vld [vmem:[#allocation8 + $0xb8] sm:$0xff] }
 0x186   :  { %v4051_v59 = vld [vmem:[#allocation8 + $0xf8] sm:$0xff] }
 0x187   :  { %2157 = vmatpush.bf16.msra.mxu2 %v3471_v1  ;;  %2170 = vmatpush.bf16.msra.mxu3 %v3599_v2  ;;  %v3443_v1 = vor.u32 %v3969_v17, %v3440_v19  ;;  %v3571_v2 = vor.u32 %v4001_v63, %v3568_v0  ;;  %v4042_v19 = vld [vmem:[#allocation8 + $0xb0] sm:$0xff] }
 0x188   :  { %v4050_v63 = vld [vmem:[#allocation8 + $0xf0] sm:$0xff] }
 0x189   :  { %2188 = vmatpush.bf16.msrb.mxu0 %v3139_v5  ;;  %2201 = vmatpush.bf16.msrb.mxu1 %v3267_v6  ;;  %v3427_v5 = vor.u32 %v3965_v3, %v3424_v38  ;;  %v3555_v6 = vor.u32 %v3997_v4, %v3552_v53  ;;  %v4049_v3 = vld [vmem:[#allocation8 + $0xe8] sm:$0xff] }
 0x18b   :  { %2158 = vmatpush.bf16.msra.mxu2 %v3455_v7  ;;  %2171 = vmatpush.bf16.msra.mxu3 %v3583_v8  ;;  %v3961_v7 = vld [vmem:[#allocation5 + $0x22c] sm:$0xf]  ;;  %v3408_v8 = vld [vmem:[#allocation5 + $0x238] sm:$0xf0] }
 0x18c   :  { %2189 = vmatmul.bf16.vlgmr.msrb.gmra.mxu0 %v4349_v23  ;;  %2202 = vmatmul.bf16.vlgmr.msrb.gmra.mxu1 %v4351_v56  ;;  %v3407_v23 = vor.u32 %v3963_v57, %v3406_v39  ;;  %v3390_v56 = vld [vmem:[#allocation5 + $0x208] sm:$0xf]  ;;  %v3411_v11 = vor.u32 %v3961_v7, %v3408_v8 }
 0x18d   :  { %v3391_v28 = vor.u32 %v3959_v27, %v3390_v56  ;;  %v4035_v56 = vld [vmem:[#allocation8 + $0x78] sm:$0xff] }
 0x18e   :  { %2111 = vmatmul.bf16.vlgmr.msrb.gmra.mxu2 %v4367_v32  ;;  %2124 = vmatmul.bf16.vlgmr.msrb.gmra.mxu3 %v4369_v18 }
 0x18f   :  { %2159 = vmatpush.bf16.msra.mxu2 %v3439_v16  ;;  %2172 = vmatpush.bf16.msra.mxu3 %v3567_v20  ;;  %v3957_v16 = vld [vmem:[#allocation5 + $0x20c] sm:$0xf]  ;;  %v3392_v20 = vld [vmem:[#allocation5 + $0x218] sm:$0xf0] }
 0x190   :  { %v3395_v55 = vor.u32 %v3957_v16, %v3392_v20  ;;  %2553 = vmatpush.bf16.msra.mxu1 %v4035_v56  ;;  %v4047_v56 = vld [vmem:[#allocation8 + $0xd8] sm:$0xff] }
 0x193   :  { %2160 = vmatpush.bf16.msra.mxu2 %v3423_v29  ;;  %2173 = vmatpush.bf16.msra.mxu3 %v3551_v30 }
 0x194   :  { %2554 = vmatpush.bf16.msra.mxu1 %v4034_v34 }
 0x197   :  { %2161 = vmatpush.bf16.msra.mxu2 %v3407_v23  ;;  %2174 = vmatpush.bf16.msra.mxu3 %v3535_v25  ;;  %v4027_v25 = vld [vmem:[#allocation8 + $0x38] sm:$0xff] }
 0x198   :  { %2540 = vmatpush.bf16.msra.mxu0 %v4027_v25  ;;  %v4039_v25 = vld [vmem:[#allocation8 + $0x98] sm:$0xff] }
 0x19b   :  { %2162 = vmatpush.bf16.msra.mxu2 %v3391_v28  ;;  %2175 = vmatpush.bf16.msra.mxu3 %v3519_v40  ;;  %v2235_v40 = vld [vmem:[#allocation7] sm:$0xf] }
 0x19c   :  { %2541 = vmatpush.bf16.msra.mxu0 %v4026_v33  ;;  %2237 = vst [vmem:[#allocation1] ss:$9 sm:$0xff] %v2235_v40  ;;  %v4038_v33 = vld [vmem:[#allocation8 + $0x90] sm:$0xff] }
 0x19e   :  { %2163 = vmatmul.bf16.vlgmr.msra.gmra.mxu2 %v4367_v32  ;;  %2176 = vmatmul.bf16.vlgmr.msra.gmra.mxu3 %v4369_v18 }
 0x19f   :  { %2207 = vmatpush.bf16.msrb.mxu2 %v3507_v13  ;;  %2220 = vmatpush.bf16.msrb.mxu3 %v3635_v14  ;;  %v4023_v14 = vld [vmem:[#allocation8 + $0x18] sm:$0xff] }
 0x1a3   :  { %2208 = vmatpush.bf16.msrb.mxu2 %v3491_v44  ;;  %2221 = vmatpush.bf16.msrb.mxu3 %v3619_v45  ;;  %v4030_v44 = vld [vmem:[#allocation8 + $0x50] sm:$0xff]  ;;  %v4021_v45 = vld [vmem:[#allocation8 + $0x8] sm:$0xff]  ;;  %v2239_v17 = vld [vmem:[#allocation1 + $0x9] sm:$0xff] }
 0x1a7   :  { %2209 = vmatpush.bf16.msrb.mxu2 %v3475_v50  ;;  %2222 = vmatpush.bf16.msrb.mxu3 %v3603_v51 }
 0x1ab   :  { %2210 = vmatpush.bf16.msrb.mxu2 %v3459_v61  ;;  %2223 = vmatpush.bf16.msrb.mxu3 %v3587_v62  ;;  %v2238_v62 = vld [vmem:[#allocation1] sm:$0xff] }
 0x1ac   :  { %v2242_v0 = vpack.i.b16 %v2238_v62, %v2238_v62 }
 0x1ae   :  { %v2244_v7 = vperm.slane %v2242_v0, 0 }
 0x1af   :  { %2211 = vmatpush.bf16.msrb.mxu2 %v3443_v1  ;;  %2224 = vmatpush.bf16.msrb.mxu3 %v3571_v2  ;;  %v2245_v1 = vpack.i.b16 %v2239_v17, %v2239_v17  ;;  %v4041_v2 = vld [vmem:[#allocation8 + $0xa8] sm:$0xff] }
 0x1b0   :  { %v2258_v22 = vunpack.c.l.bf16 %v2244_v7 }
 0x1b1   :  { %v2247_v8 = vperm.slane %v2245_v1, 0 }
 0x1b3   :  { %2212 = vmatpush.bf16.msrb.mxu2 %v3427_v5  ;;  %2225 = vmatpush.bf16.msrb.mxu3 %v3555_v6 }
 0x1b7   :  { %2213 = vmatpush.bf16.msrb.mxu2 %v3411_v11  ;;  %2226 = vmatpush.bf16.msrb.mxu3 %v3539_v15  ;;  %v4040_v11 = vld [vmem:[#allocation8 + $0xa0] sm:$0xff] }
 0x1b8   :  { %v4048_v15 = vld [vmem:[#allocation8 + $0xe0] sm:$0xff] }
 0x1bb   :  { %2214 = vmatpush.bf16.msrb.mxu2 %v3395_v55  ;;  %2227 = vmatpush.bf16.msrb.mxu3 %v3523_v24  ;;  %v2259_v55 = vunpack.c.l.bf16 %v2247_v8 }
 0x1be   :  { %2215 = vmatmul.bf16.vlgmr.msrb.gmra.mxu2 %v4367_v32  ;;  %2228 = vmatmul.bf16.vlgmr.msrb.gmra.mxu3 %v4369_v18  ;;  %v4025_v32 = vld [vmem:[#allocation8 + $0x28] sm:$0xff] }
 0x1bf   :  { %v4033_v18 = vld [vmem:[#allocation8 + $0x68] sm:$0xff]  ;;  %2542 = vmatpush.bf16.msra.mxu0 %v4025_v32  ;;  %2566 = vmatpush.bf16.msra.mxu2 %v4043_v54 }
 0x1c0   :  { %2555 = vmatpush.bf16.msra.mxu1 %v4033_v18  ;;  %2579 = vmatpush.bf16.msra.mxu3 %v4051_v59  ;;  %v4046_v18 = vld [vmem:[#allocation8 + $0xd0] sm:$0xff] }
 0x1c3   :  { %2543 = vmatpush.bf16.msra.mxu0 %v4024_v35  ;;  %2567 = vmatpush.bf16.msra.mxu2 %v4042_v19  ;;  %v4037_v35 = vld [vmem:[#allocation8 + $0x88] sm:$0xff] }
 0x1c4   :  { %2556 = vmatpush.bf16.msra.mxu1 %v4032_v36  ;;  %2580 = vmatpush.bf16.msra.mxu3 %v4050_v63  ;;  %v4045_v36 = vld [vmem:[#allocation8 + $0xc8] sm:$0xff] }
 0x1c7   :  { %2544 = vmatpush.bf16.msra.mxu0 %v4023_v14  ;;  %2568 = vmatpush.bf16.msra.mxu2 %v4041_v2 }
 0x1c8   :  { %2557 = vmatpush.bf16.msra.mxu1 %v4031_v26  ;;  %2581 = vmatpush.bf16.msra.mxu3 %v4049_v3  ;;  %v2240_v26 = vld [vmem:[#allocation1 + $0x12] sm:$0xff] }
 0x1c9   :  { %v2034_v29 = vpop.f32.mrf.mxu0  ;;  %v2047_v30 = vpop.f32.mrf.mxu1 }
 0x1ca   :  { %v4381_v39 = vadd.f32 %v2047_v30, %v2034_v29 }
 0x1cb   :  { %2545 = vmatpush.bf16.msra.mxu0 %v4022_v43  ;;  %2569 = vmatpush.bf16.msra.mxu2 %v4040_v11 }
 0x1cc   :  { %2558 = vmatpush.bf16.msra.mxu1 %v4030_v44  ;;  %2582 = vmatpush.bf16.msra.mxu3 %v4048_v15 }
 0x1cf   :  { %2546 = vmatpush.bf16.msra.mxu0 %v4021_v45  ;;  %2570 = vmatpush.bf16.msra.mxu2 %v4039_v25 }
 0x1d0   :  { %2559 = vmatpush.bf16.msra.mxu1 %v4029_v46  ;;  %2583 = vmatpush.bf16.msra.mxu3 %v4047_v56 }
 0x1d1   :  { %v2036_v57 = vpop.f32.mrf.mxu0  ;;  %v2049_v58 = vpop.f32.mrf.mxu1 }
 0x1d3   :  { %2547 = vmatpush.bf16.msra.mxu0 %v4020_v47  ;;  %2571 = vmatpush.bf16.msra.mxu2 %v4038_v33 }
 0x1d4   :  { %2560 = vmatpush.bf16.msra.mxu1 %v4028_v48  ;;  %2584 = vmatpush.bf16.msra.mxu3 %v4046_v18 }
 0x1d7   :  { %2572 = vmatpush.bf16.msra.mxu2 %v4037_v35 }
 0x1d8   :  { %2585 = vmatpush.bf16.msra.mxu3 %v4045_v36 }
 0x1d9   :  { %v4383_v31 = vpop.f32.mrf.mxu0  ;;  %v2099_v23 = vpop.f32.mrf.mxu1 }
 0x1da   :  { %v2100_v38 = vadd.f32 %v2099_v23, %v4383_v31 }
 0x1e1   :  { %v2088_v27 = vpop.f32.mrf.mxu0  ;;  %v2101_v12 = vpop.f32.mrf.mxu1 }
 0x1e9   :  { %v2138_v37 = vpop.f32.mrf.mxu0  ;;  %v2151_v28 = vpop.f32.mrf.mxu1 }
 0x1ea   :  { %v4385_v13 = vadd.f32 %v2151_v28, %v2138_v37  ;;  %v4036_v37 = vld [vmem:[#allocation8 + $0x80] sm:$0xff] }
 0x1eb   :  { %v4044_v28 = vld [vmem:[#allocation8 + $0xc0] sm:$0xff]  ;;  %2573 = vmatpush.bf16.msra.mxu2 %v4036_v37 }
 0x1ec   :  { %2586 = vmatpush.bf16.msra.mxu3 %v4044_v28 }
 0x1f1   :  { %v2140_v41 = vpop.f32.mrf.mxu0  ;;  %v2153_v42 = vpop.f32.mrf.mxu1 }
 0x1f2   :  { %v2241_v41 = vld [vmem:[#allocation1 + $0x1b] sm:$0xff]  ;;  %v2248_v42 = vpack.i.b16 %v2240_v26, %v2240_v26 }
 0x1f3   :  { %v2251_v43 = vpack.i.b16 %v2241_v41, %v2241_v41 }
 0x201   :  { %v2060_v49 = vpop.f32.mrf.mxu2  ;;  %v2073_v50 = vpop.f32.mrf.mxu3 }
 0x202   :  { %v2061_v4 = vadd.f32 %v2060_v49, %v4381_v39  ;;  %v2250_v49 = vperm.slane %v2248_v42, 0 }
 0x204   :  { %v2074_v16 = vadd.f32 %v2073_v50, %v2061_v4  ;;  %v2253_v50 = vperm.slane %v2251_v43, 0  ;;  %v2260_v59 = vunpack.c.l.bf16 %v2250_v49 }
 0x206   :  { %v2261_v62 = vunpack.c.l.bf16 %v2253_v50 }
 0x209   :  { %v2062_v51 = vpop.f32.mrf.mxu2  ;;  %v2075_v52 = vpop.f32.mrf.mxu3 }
 0x20a   :  { %v4387_v60 = vpop.f32.mrf.mxu0  ;;  %v4389_v61 = vpop.f32.mrf.mxu1 }
 0x20b   :  { %v2204_v44 = vadd.f32 %v4389_v61, %v4387_v60 }
 0x211   :  { %v2112_v53 = vpop.f32.mrf.mxu2  ;;  %v2125_v5 = vpop.f32.mrf.mxu3 }
 0x212   :  { %v2113_v6 = vadd.f32 %v2112_v53, %v2100_v38  ;;  %v2192_v9 = vpop.f32.mrf.mxu0  ;;  %v2205_v10 = vpop.f32.mrf.mxu1 }
 0x214   :  { %v2126_v20 = vadd.f32 %v2125_v5, %v2113_v6  ;;  %v4066_v6 = vld [vmem:[%s4410_s8] ss:$0 sm:$0xff] }
 0x216   :  { %v2233_v21 = vpack.c.bf16 %v2126_v20, %v2074_v16 }
 0x218   :  { %v2254_v24 = vunpack.c.l.bf16 %v2233_v21  ;;  %v2255_v29 = vunpack.c.h.bf16 %v2233_v21 }
 0x219   :  { %v2114_v30 = vpop.f32.mrf.mxu2  ;;  %v2127_v39 = vpop.f32.mrf.mxu3 }
 0x21a   :  { %v2262_v57 = vadd.f32 %v2258_v22, %v2254_v24  ;;  %v2263_v58 = vadd.f32 %v2259_v55, %v2255_v29 }
 0x21c   :  { %v2272_v31 = vmax.f32 %v2262_v57, 0.0  ;;  %v2273_v23 = vmax.f32 %v2263_v58, 0.0 }
 0x21e   :  { %v2276_v27 = vpack.c.bf16 %v2272_v31, %v2272_v31  ;;  %v2277_v12 = vpack.c.bf16 %v2273_v23, %v2273_v23 }
 0x220   :  { %2548 = vmatmul.bf16.vlgmr.msra.gmra.mxu0 %v2276_v27  ;;  %2561 = vmatmul.bf16.vlgmr.msra.gmra.mxu1 %v2277_v12 }
 0x221   :  { %v2164_v34 = vpop.f32.mrf.mxu2  ;;  %v2177_v32 = vpop.f32.mrf.mxu3 }
 0x222   :  { %v2165_v45 = vadd.f32 %v2164_v34, %v4385_v13 }
 0x224   :  { %v2178_v51 = vadd.f32 %v2177_v32, %v2165_v45 }
 0x229   :  { %v2166_v40 = vpop.f32.mrf.mxu2  ;;  %v2179_v14 = vpop.f32.mrf.mxu3 }
 0x241   :  { %v2216_v46 = vpop.f32.mrf.mxu2  ;;  %v2229_v47 = vpop.f32.mrf.mxu3 }
 0x242   :  { %v2217_v48 = vadd.f32 %v2216_v46, %v2204_v44 }
 0x244   :  { %v2230_v52 = vadd.f32 %v2229_v47, %v2217_v48 }
 0x246   :  { %v2234_v54 = vpack.c.bf16 %v2230_v52, %v2178_v51 }
 0x248   :  { %v2256_v17 = vunpack.c.l.bf16 %v2234_v54  ;;  %v2257_v19 = vunpack.c.h.bf16 %v2234_v54 }
 0x249   :  { %v2218_v63 = vpop.f32.mrf.mxu2  ;;  %v2231_v0 = vpop.f32.mrf.mxu3 }
 0x24a   :  { %v2264_v1 = vadd.f32 %v2260_v59, %v2256_v17  ;;  %v2265_v2 = vadd.f32 %v2261_v62, %v2257_v19 }
 0x24c   :  { %v2274_v3 = vmax.f32 %v2264_v1, 0.0  ;;  %v2275_v60 = vmax.f32 %v2265_v2, 0.0 }
 0x24e   :  { %v2278_v61 = vpack.c.bf16 %v2274_v3, %v2274_v3  ;;  %v2279_v13 = vpack.c.bf16 %v2275_v60, %v2275_v60 }
 0x250   :  { %2574 = vmatmul.bf16.vlgmr.msra.gmra.mxu2 %v2278_v61  ;;  %2587 = vmatmul.bf16.vlgmr.msra.gmra.mxu3 %v2279_v13 }
 0x29d   :  { %v2549_v38 = vpop.f32.mrf.mxu0  ;;  %v2562_v4 = vpop.f32.mrf.mxu1 }
 0x29e   :  { %v2550_v7 = vadd.f32 %v4066_v6, %v2549_v38 }
 0x2a0   :  { %v2563_v8 = vadd.f32 %v2562_v4, %v2550_v7 }
 0x2a5   :  { %v2551_v53 = vpop.f32.mrf.mxu0  ;;  %v2564_v5 = vpop.f32.mrf.mxu1 }
 0x2d3   :  { %v2575_v9 = vpop.f32.mrf.mxu2  ;;  %v2588_v10 = vpop.f32.mrf.mxu3 }
 0x2d4   :  { %v2576_v11 = vadd.f32 %v2575_v9, %v2563_v8 }
 0x2d6   :  { %v2589_v15 = vadd.f32 %v2588_v10, %v2576_v11 }
 0x2d8   :  { %2592 = vst [vmem:[#allocation10] sm:$0xff] %v2589_v15 }
 0x2d9   :  { %2603 = dma.vmem_to_hbm [thread:$0]  %s2599_s15, 128, %s2601_s18, [#allocation4]  }
 0x2db   :  { %v2577_v16 = vpop.f32.mrf.mxu2  ;;  %v2590_v20 = vpop.f32.mrf.mxu3 }
 0x2dc   :  { %4193 = dma.done.wait [#allocation4], 128  }
 0x2dd   :  { %4194 = vsyncadd [#allocation4], 4294967168 }
 0x2de   :  { %2608 = vsyncpa [#allocation3], 1 }
 0x2df   :  { %2609 = vsyncpa [#allocation6], 1 }
 0x2e0   :  { %2610 = vsyncpa [#allocation9], 1 }
 0x2e1   :  { %2611 = vsyncpa [#allocation4], 1 }

</bundles_post_ra>
